<compile_context>
chip_gen: v7x
topology: tpu7x:2x2x1
jax: 0.10.0
libtpu: 0.0.40
codegen_flags: <defaults>
</compile_context>

<pallas_src>
import math

import jax
import jax.numpy as jnp
from jax.experimental import pallas as pl
from jax.experimental.pallas import tpu as pltpu

# ---- small synthetic KoBERT config (lane-dense: H, 3H, I all multiples of 128) ------------------
VOCAB = 128
MAX_POS = 16
HIDDEN = 128          # lane-dense hidden size (real KoBERT: 768)
N_HEADS = 2
HEAD_DIM = HIDDEN // N_HEADS   # 64, matches real KoBERT head size
N_LAYERS = 2
INTERMEDIATE = 512
LN_EPS = 1e-12
BATCH_TILE = 1        # batch tile per grid step (leading "parallel" axis; v7x uses both cores)


# ---- fused per-tower Pallas kernel ---------------------------------------------------------------
def _tower_kernel(emb_ref, mask_ref, eg_ref, eb_ref,
                  wqkv_ref, bqkv_ref, wo_ref, bo_ref, ln1g_ref, ln1b_ref,
                  w1_ref, b1_ref, w2_ref, b2_ref, ln2g_ref, ln2b_ref,
                  pw_ref, pb_ref,
                  pooled_ref,          # output: (TB, 1, H) pooler_output for this batch tile
                  h_ref):              # VMEM scratch: (TB*S, H) hidden state, resident across layers
    layer = pl.program_id(1)
    TB = mask_ref.shape[0]
    S = mask_ref.shape[2]
    BS = emb_ref.shape[0]              # TB * S

    def ln(x, g, b):                   # f32 layernorm on the VPU/EUP (v5e-safe)
        mu = jnp.mean(x, axis=-1, keepdims=True)
        var = jnp.mean((x - mu) ** 2, axis=-1, keepdims=True)
        return (x - mu) * jax.lax.rsqrt(var + LN_EPS) * g + b

    # --- layer 0: embedding layernorm (re-initializes h for each batch tile) ---
    @pl.when(layer == 0)
    def _():
        h_ref[...] = ln(emb_ref[...], eg_ref[...], eb_ref[...])

    h = h_ref[...]                                              # (BS, H) f32
    h_bf = h.astype(jnp.bfloat16)                               # single cast for the QKV matmul

    # --- fused QKV projection: one MXU pass, one bf16 cast of the result --------------------------
    qkv = jnp.dot(h_bf, wqkv_ref[...],
                  preferred_element_type=jnp.float32) + bqkv_ref[...]    # (BS, 3H) f32
    qkv_bf = qkv.astype(jnp.bfloat16)                           # single cast; sliced below
    q3 = qkv_bf[:, 0 * HIDDEN:1 * HIDDEN].reshape(TB, S, HIDDEN)
    k3 = qkv_bf[:, 1 * HIDDEN:2 * HIDDEN].reshape(TB, S, HIDDEN)
    v3 = qkv_bf[:, 2 * HIDDEN:3 * HIDDEN].reshape(TB, S, HIDDEN)

    # --- multi-head attention; mask broadcast in-kernel; heads merged before one Wo matmul --------
    scale = 1.0 / math.sqrt(HEAD_DIM)
    mask = mask_ref[...]                                        # (TB, 1, S) additive mask
    ctx_heads = []
    for hh in range(N_HEADS):                                   # static unroll (N_HEADS is small)
        d = slice(hh * HEAD_DIM, (hh + 1) * HEAD_DIM)
        qh, kh, vh = q3[:, :, d], k3[:, :, d], v3[:, :, d]      # bf16 (TB, S, Dh), sliced once
        s = jnp.einsum("bqd,bkd->bqk", qh, kh,
                       preferred_element_type=jnp.float32) * scale + mask
        s = s - jnp.max(s, axis=-1, keepdims=True)              # f32 softmax
        p = jnp.exp(s)
        p = p * pl.reciprocal(jnp.sum(p, axis=-1, keepdims=True), approx=True)
        ctx_heads.append(
            jnp.einsum("bqk,bkd->bqd", p.astype(jnp.bfloat16), vh,
                       preferred_element_type=jnp.float32))     # (TB, S, Dh) f32
    # merge_heads: heads contiguous in lanes -> layout-free reshape, then ONE full-K projection
    ctx_all = jnp.concatenate(ctx_heads, axis=-1).reshape(BS, HIDDEN)
    attn = jnp.dot(ctx_all.astype(jnp.bfloat16), wo_ref[...],
                   preferred_element_type=jnp.float32) + bo_ref[...]
    h1 = ln(attn + h, ln1g_ref[...], ln1b_ref[...])

    # --- feed-forward (gelu in f32; single bf16 casts feed the MXU) --------------------------------
    h1_bf = h1.astype(jnp.bfloat16)
    ffn = jax.nn.gelu(jnp.dot(h1_bf, w1_ref[...],
                              preferred_element_type=jnp.float32) + b1_ref[...],
                      approximate=True)
    ffn_bf = ffn.astype(jnp.bfloat16)
    h2 = ln(jnp.dot(ffn_bf, w2_ref[...],
                    preferred_element_type=jnp.float32) + b2_ref[...] + h1,
            ln2g_ref[...], ln2b_ref[...])
    h_ref[...] = h2

    # --- finalize at the last layer: pooler (dense + tanh) on the CLS rows -------------------------
    @pl.when(layer == pl.num_programs(1) - 1)
    def _():
        cls = h2.reshape(TB, S, HIDDEN)[:, 0, :]                # from the in-register value
        pooled = jnp.tanh(jnp.dot(cls.astype(jnp.bfloat16), pw_ref[...],
                                  preferred_element_type=jnp.float32) + pb_ref[...])
        pooled_ref[...] = pooled.reshape(TB, 1, HIDDEN).astype(pooled_ref.dtype)


def bert_encode_pallas(params, input_ids, attn_mask):
    """Returns pooler_output: tanh(W_p @ hidden[:, 0] + b_p) for one tower."""
    B, S = input_ids.shape
    TB = BATCH_TILE
    assert B % TB == 0

    # Embedding gather kept as plain-JAX glue (token_type_ids default to 0, as in HF BertModel).
    we = jnp.take(params["word_emb"], input_ids, axis=0)        # (B, S, H)
    pe = params["pos_emb"][:S][None, :, :]
    te = params["type_emb"][0][None, None, :]
    emb = (we + pe + te).reshape(B * S, HIDDEN).astype(jnp.float32)

    # Additive mask kept small: (B, 1, S); broadcast to (TB, S, S) happens inside the kernel.
    mask = ((1.0 - attn_mask.astype(jnp.float32)) * -1e9).reshape(B, 1, S)

    def fixed(shape):                  # same block every grid step (fetched once)
        return pl.BlockSpec(shape, lambda b, l: (0,) * len(shape))

    def per_layer(shape):              # stacked (L, ...) weight, layer dim squeezed in-kernel
        return pl.BlockSpec((None,) + shape, lambda b, l: (l,) + (0,) * len(shape))

    pooled = pl.pallas_call(
        _tower_kernel,
        grid=(B // TB, N_LAYERS),
        in_specs=[
            pl.BlockSpec((TB * S, HIDDEN), lambda b, l: (b, 0)),       # emb (per batch tile)
            pl.BlockSpec((TB, 1, S), lambda b, l: (b, 0, 0)),          # additive mask (per tile)
            fixed((1, HIDDEN)), fixed((1, HIDDEN)),                    # emb layernorm gamma / beta
            per_layer((HIDDEN, 3 * HIDDEN)),                           # wqkv (fused Q|K|V)
            per_layer((1, 3 * HIDDEN)),                                # bqkv
            per_layer((HIDDEN, HIDDEN)),                               # wo
            per_layer((1, HIDDEN)),                                    # bo
            per_layer((1, HIDDEN)), per_layer((1, HIDDEN)),            # ln1 gamma / beta
            per_layer((HIDDEN, INTERMEDIATE)), per_layer((1, INTERMEDIATE)),   # w1 / b1
            per_layer((INTERMEDIATE, HIDDEN)), per_layer((1, HIDDEN)),         # w2 / b2
            per_layer((1, HIDDEN)), per_layer((1, HIDDEN)),            # ln2 gamma / beta
            fixed((HIDDEN, HIDDEN)), fixed((1, HIDDEN)),               # pooler w / b
        ],
        # constant over the layer axis (block stays resident, written once at the last layer),
        # advances with the batch-tile axis.
        out_specs=pl.BlockSpec((TB, 1, HIDDEN), lambda b, l: (b, 0, 0)),
        out_shape=jax.ShapeDtypeStruct((B, 1, HIDDEN), jnp.float32),
        scratch_shapes=[pltpu.VMEM((TB * S, HIDDEN), jnp.float32)],    # per-tile hidden state
        compiler_params=pltpu.CompilerParams(
            dimension_semantics=("parallel", "arbitrary"),   # batch tiles independent; layers seq.
            vmem_limit_bytes=32 * 1024 * 1024,               # raise (64-96 MiB) on v6e at real sizes
        ),
    )(emb, mask,
      params["emb_ln_g"], params["emb_ln_b"],
      params["wqkv"], params["bqkv"], params["wo"], params["bo"],
      params["ln1_g"], params["ln1_b"],
      params["w1"], params["b1"], params["w2"], params["b2"],
      params["ln2_g"], params["ln2_b"],
      params["pooler_w"], params["pooler_b"])
    return pooled.reshape(B, HIDDEN)


_encode_jit = jax.jit(bert_encode_pallas)


# ---- parameter init (weights stored bf16 for the MXU; biases / LN / embeddings f32) --------------
def init_bert_params(key):
    def nrm(k, shape, dtype=jnp.bfloat16, scale=0.02):
        return (scale * jax.random.normal(k, shape, dtype=jnp.float32)).astype(dtype)

    ks = jax.random.split(key, 8)
    return {
        "word_emb": nrm(ks[0], (VOCAB, HIDDEN), jnp.float32),
        "pos_emb": nrm(ks[1], (MAX_POS, HIDDEN), jnp.float32),
        "type_emb": nrm(ks[2], (2, HIDDEN), jnp.float32),
        "emb_ln_g": jnp.ones((1, HIDDEN), jnp.float32),
        "emb_ln_b": jnp.zeros((1, HIDDEN), jnp.float32),
        # per-layer weights stacked on a leading layer axis (indexed by the grid)
        "wqkv": nrm(ks[3], (N_LAYERS, HIDDEN, 3 * HIDDEN)),
        "bqkv": jnp.zeros((N_LAYERS, 1, 3 * HIDDEN), jnp.float32),
        "wo": nrm(ks[4], (N_LAYERS, HIDDEN, HIDDEN)),
        "bo": jnp.zeros((N_LAYERS, 1, HIDDEN), jnp.float32),
        "ln1_g": jnp.ones((N_LAYERS, 1, HIDDEN), jnp.float32),
        "ln1_b": jnp.zeros((N_LAYERS, 1, HIDDEN), jnp.float32),
        "w1": nrm(ks[5], (N_LAYERS, HIDDEN, INTERMEDIATE)),
        "b1": jnp.zeros((N_LAYERS, 1, INTERMEDIATE), jnp.float32),
        "w2": nrm(ks[6], (N_LAYERS, INTERMEDIATE, HIDDEN)),
        "b2": jnp.zeros((N_LAYERS, 1, HIDDEN), jnp.float32),
        "ln2_g": jnp.ones((N_LAYERS, 1, HIDDEN), jnp.float32),
        "ln2_b": jnp.zeros((N_LAYERS, 1, HIDDEN), jnp.float32),
        "pooler_w": nrm(ks[7], (HIDDEN, HIDDEN)),
        "pooler_b": jnp.zeros((1, HIDDEN), jnp.float32),
    }


# ---- pure-JAX reference (same bf16-MXU / f32-accumulate math) for the correctness check ----------
def bert_encode_ref(params, input_ids, attn_mask):
    B, S = input_ids.shape
    BS = B * S

    def mxu(x, w):
        return jnp.dot(x.astype(jnp.bfloat16), w, preferred_element_type=jnp.float32)

    def ln(x, g, b):
        mu = jnp.mean(x, axis=-1, keepdims=True)
        var = jnp.mean((x - mu) ** 2, axis=-1, keepdims=True)
        return (x - mu) * jax.lax.rsqrt(var + LN_EPS) * g + b

    we = jnp.take(params["word_emb"], input_ids, axis=0)
    pe = params["pos_emb"][:S][None, :, :]
    te = params["type_emb"][0][None, None, :]
    h = ln((we + pe + te).reshape(BS, HIDDEN).astype(jnp.float32),
           params["emb_ln_g"], params["emb_ln_b"])
    mask = ((1.0 - attn_mask.astype(jnp.float32)) * -1e9)[:, None, None, :]   # (B,1,1,S)

    for l in range(N_LAYERS):
        qkv = mxu(h, params["wqkv"][l]) + params["bqkv"][l]
        q, k, v = jnp.split(qkv, 3, axis=-1)

        def heads(x):
            return x.reshape(B, S, N_HEADS, HEAD_DIM).transpose(0, 2, 1, 3)

        qh, kh, vh = heads(q), heads(k), heads(v)
        s = jnp.einsum("bhqd,bhkd->bhqk",
                       qh.astype(jnp.bfloat16), kh.astype(jnp.bfloat16),
                       preferred_element_type=jnp.float32) / math.sqrt(HEAD_DIM) + mask
        p = jax.nn.softmax(s, axis=-1)
        ctx = jnp.einsum("bhqk,bhkd->bhqd",
                         p.astype(jnp.bfloat16), vh.astype(jnp.bfloat16),
                         preferred_element_type=jnp.float32)
        ctx = ctx.transpose(0, 2, 1, 3).reshape(BS, HIDDEN)
        attn = mxu(ctx, params["wo"][l]) + params["bo"][l]
        h1 = ln(attn + h, params["ln1_g"][l], params["ln1_b"][l])
        ffn = jax.nn.gelu(mxu(h1, params["w1"][l]) + params["b1"][l], approximate=True)
        h = ln(mxu(ffn, params["w2"][l]) + params["b2"][l] + h1,
               params["ln2_g"][l], params["ln2_b"][l])

    cls = h.reshape(B, S, HIDDEN)[:, 0, :]
    return jnp.tanh(mxu(cls, params["pooler_w"]) + params["pooler_b"])


# ---- bi-encoder wrapper (two towers, pooler_output) ----------------------------------------------
class KobertBiEncoder:
    """JAX/Pallas analogue of the PyTorch KobertBiEncoder (two BERT towers, pooler_output)."""

    def __init__(self, key):
        kp, kq = jax.random.split(key)
        self.passage_encoder = init_bert_params(kp)
        self.query_encoder = init_bert_params(kq)
        self.emb_sz = HIDDEN  # == pooler.dense.out_features

    def forward(self, x, attn_mask, type: str = "passage"):
        assert type in ("passage", "query"), "type should be either 'passage' or 'query'"
        params = self.passage_encoder if type == "passage" else self.query_encoder
        return _encode_jit(params, x, attn_mask)

    # TODO(synk): checkpoint()/load() are torch.save/torch.load file I/O — no Pallas equivalent.


if __name__ == "__main__":
    key = jax.random.PRNGKey(0)
    model = KobertBiEncoder(key)

    B, S = 2, 8
    input_ids = jax.random.randint(jax.random.PRNGKey(1), (B, S), 0, VOCAB, dtype=jnp.int32)
    attn_mask = jnp.array([[1, 1, 1, 1, 1, 1, 1, 1],
                           [1, 1, 1, 1, 1, 0, 0, 0]], dtype=jnp.int32)

    passage_emb = model.forward(input_ids, attn_mask, "passage")
    query_emb = model.forward(input_ids, attn_mask, "query")
    jax.block_until_ready((passage_emb, query_emb))

    # correctness check vs. pure-JAX reference using identical bf16-MXU / f32 math
    ref_passage = bert_encode_ref(model.passage_encoder, input_ids, attn_mask)
    ref_query = bert_encode_ref(model.query_encoder, input_ids, attn_mask)
    assert passage_emb.shape == (B, HIDDEN) and query_emb.shape == (B, HIDDEN)
    assert jnp.allclose(passage_emb, ref_passage, atol=2e-3, rtol=2e-3)
    assert jnp.allclose(query_emb, ref_query, atol=2e-3, rtol=2e-3)

    print("KERNEL_OK")
</pallas_src>

<mosaic_0001>
module attributes {stable_mosaic.version = 11 : i64} {
  func.func @_tower_kernel(%arg0: i32, %arg1: i32, %arg2: memref<8x128xf32, #tpu.memory_space<vmem>>, %arg3: memref<1x1x8xf32, #tpu.memory_space<vmem>>, %arg4: memref<1x128xf32, #tpu.memory_space<vmem>>, %arg5: memref<1x128xf32, #tpu.memory_space<vmem>>, %arg6: memref<1x128x384xbf16, #tpu.memory_space<vmem>>, %arg7: memref<1x1x384xf32, #tpu.memory_space<vmem>>, %arg8: memref<1x128x128xbf16, #tpu.memory_space<vmem>>, %arg9: memref<1x1x128xf32, #tpu.memory_space<vmem>>, %arg10: memref<1x1x128xf32, #tpu.memory_space<vmem>>, %arg11: memref<1x1x128xf32, #tpu.memory_space<vmem>>, %arg12: memref<1x128x512xbf16, #tpu.memory_space<vmem>>, %arg13: memref<1x1x512xf32, #tpu.memory_space<vmem>>, %arg14: memref<1x512x128xbf16, #tpu.memory_space<vmem>>, %arg15: memref<1x1x128xf32, #tpu.memory_space<vmem>>, %arg16: memref<1x1x128xf32, #tpu.memory_space<vmem>>, %arg17: memref<1x1x128xf32, #tpu.memory_space<vmem>>, %arg18: memref<128x128xbf16, #tpu.memory_space<vmem>>, %arg19: memref<1x128xf32, #tpu.memory_space<vmem>>, %arg20: memref<1x1x128xf32, #tpu.memory_space<vmem>>, %arg21: memref<8x128xf32, #tpu.memory_space<vmem>>) attributes {dimension_semantics = [#tpu.dimension_semantics<parallel>, #tpu.dimension_semantics<arbitrary>], iteration_bounds = array<i64: 2, 2>, scalar_prefetch = 0 : i64, scratch_operands = 1 : i64, tpu.core_type = #tpu.core_type<tc>, window_params = [{transform_indices = @transform_0, window_bounds = array<i64: 8, 128>}, {transform_indices = @transform_1, window_bounds = array<i64: 1, 1, 8>}, {pipeline_mode = #tpu.pipeline_mode<synchronous>, transform_indices = @transform_2, window_bounds = array<i64: 1, 128>}, {pipeline_mode = #tpu.pipeline_mode<synchronous>, transform_indices = @transform_3, window_bounds = array<i64: 1, 128>}, {transform_indices = @transform_4, window_bounds = array<i64: 1, 128, 384>}, {transform_indices = @transform_5, window_bounds = array<i64: 1, 1, 384>}, {transform_indices = @transform_6, window_bounds = array<i64: 1, 128, 128>}, {transform_indices = @transform_7, window_bounds = array<i64: 1, 1, 128>}, {transform_indices = @transform_8, window_bounds = array<i64: 1, 1, 128>}, {transform_indices = @transform_9, window_bounds = array<i64: 1, 1, 128>}, {transform_indices = @transform_10, window_bounds = array<i64: 1, 128, 512>}, {transform_indices = @transform_11, window_bounds = array<i64: 1, 1, 512>}, {transform_indices = @transform_12, window_bounds = array<i64: 1, 512, 128>}, {transform_indices = @transform_13, window_bounds = array<i64: 1, 1, 128>}, {transform_indices = @transform_14, window_bounds = array<i64: 1, 1, 128>}, {transform_indices = @transform_15, window_bounds = array<i64: 1, 1, 128>}, {pipeline_mode = #tpu.pipeline_mode<synchronous>, transform_indices = @transform_16, window_bounds = array<i64: 128, 128>}, {pipeline_mode = #tpu.pipeline_mode<synchronous>, transform_indices = @transform_17, window_bounds = array<i64: 1, 128>}, {transform_indices = @transform_18, window_bounds = array<i64: 1, 1, 128>}]} {
    %c0_i32 = arith.constant 0 : i32
    %0 = arith.cmpi eq, %arg1, %c0_i32 : i32
    %1 = arith.extui %0 : i1 to i32
    %c0_i32_0 = arith.constant 0 : i32
    %2 = arith.cmpi ne, %1, %c0_i32_0 : i32
    scf.if %2 {
      %c0_71 = arith.constant 0 : index
      %c0_72 = arith.constant 0 : index
      %157 = vector.load %arg2[%c0_71, %c0_72] : memref<8x128xf32, #tpu.memory_space<vmem>>, vector<8x128xf32>
      %c0_73 = arith.constant 0 : index
      %c0_74 = arith.constant 0 : index
      %158 = vector.load %arg4[%c0_73, %c0_74] : memref<1x128xf32, #tpu.memory_space<vmem>>, vector<1x128xf32>
      %c0_75 = arith.constant 0 : index
      %c0_76 = arith.constant 0 : index
      %159 = vector.load %arg5[%c0_75, %c0_76] : memref<1x128xf32, #tpu.memory_space<vmem>>, vector<1x128xf32>
      %cst_77 = arith.constant dense<0.000000e+00> : vector<8xf32>
      %160 = vector.multi_reduction <add>, %157, %cst_77 [1] : vector<8x128xf32> to vector<8xf32>
      %161 = vector.shape_cast %160 : vector<8xf32> to vector<8x1xf32>
      %cst_78 = arith.constant 1.280000e+02 : f32
      %162 = vector.broadcast %cst_78 : f32 to vector<8x1xf32>
      %163 = arith.divf %161, %162 : vector<8x1xf32>
      %164 = vector.broadcast %163 : vector<8x1xf32> to vector<8x128xf32>
      %165 = arith.subf %157, %164 : vector<8x128xf32>
      %166 = arith.mulf %165, %165 : vector<8x128xf32>
      %cst_79 = arith.constant dense<0.000000e+00> : vector<8xf32>
      %167 = vector.multi_reduction <add>, %166, %cst_79 [1] : vector<8x128xf32> to vector<8xf32>
      %168 = vector.shape_cast %167 : vector<8xf32> to vector<8x1xf32>
      %cst_80 = arith.constant 1.280000e+02 : f32
      %169 = vector.broadcast %cst_80 : f32 to vector<8x1xf32>
      %170 = arith.divf %168, %169 : vector<8x1xf32>
      %171 = vector.broadcast %163 : vector<8x1xf32> to vector<8x128xf32>
      %172 = arith.subf %157, %171 : vector<8x128xf32>
      %cst_81 = arith.constant 9.99999996E-13 : f32
      %173 = vector.broadcast %cst_81 : f32 to vector<8x1xf32>
      %174 = arith.addf %170, %173 : vector<8x1xf32>
      %175 = math.rsqrt %174 : vector<8x1xf32>
      %176 = vector.broadcast %175 : vector<8x1xf32> to vector<8x128xf32>
      %177 = arith.mulf %172, %176 : vector<8x128xf32>
      %178 = vector.broadcast %158 : vector<1x128xf32> to vector<8x128xf32>
      %179 = arith.mulf %177, %178 : vector<8x128xf32>
      %180 = vector.broadcast %159 : vector<1x128xf32> to vector<8x128xf32>
      %181 = arith.addf %179, %180 : vector<8x128xf32>
      %c0_82 = arith.constant 0 : index
      %c0_83 = arith.constant 0 : index
      %182 = vector.load %arg21[%c0_82, %c0_83] : memref<8x128xf32, #tpu.memory_space<vmem>>, vector<8x128xf32>
      tpu.vector_store %arg21[%c0_82, %c0_83], %181 {strides = array<i32>} : memref<8x128xf32, #tpu.memory_space<vmem>>, vector<8x128xf32>,
    } else {
    }
    %c0 = arith.constant 0 : index
    %c0_1 = arith.constant 0 : index
    %3 = vector.load %arg21[%c0, %c0_1] : memref<8x128xf32, #tpu.memory_space<vmem>>, vector<8x128xf32>
    %4 = arith.truncf %3 : vector<8x128xf32> to vector<8x128xbf16>
    %c0_2 = arith.constant 0 : index
    %c0_3 = arith.constant 0 : index
    %c0_4 = arith.constant 0 : index
    %5 = vector.load %arg6[%c0_2, %c0_3, %c0_4] : memref<1x128x384xbf16, #tpu.memory_space<vmem>>, vector<1x128x384xbf16>
    %6 = vector.shape_cast %5 : vector<1x128x384xbf16> to vector<128x384xbf16>
    %cst = arith.constant dense<0.000000e+00> : vector<8x384xf32>
    %7 = tpu.matmul %4, %6, %cst {dimension_numbers = #tpu.dot_dimension_numbers<[1], [0], [0], [1], [0, 0, 1, 1], [], []>} : vector<8x128xbf16>, vector<128x384xbf16>, vector<8x384xf32> -> vector<8x384xf32>
    %c0_5 = arith.constant 0 : index
    %c0_6 = arith.constant 0 : index
    %c0_7 = arith.constant 0 : index
    %8 = vector.load %arg7[%c0_5, %c0_6, %c0_7] : memref<1x1x384xf32, #tpu.memory_space<vmem>>, vector<1x1x384xf32>
    %9 = vector.shape_cast %8 : vector<1x1x384xf32> to vector<1x384xf32>
    %10 = vector.broadcast %9 : vector<1x384xf32> to vector<8x384xf32>
    %11 = arith.addf %7, %10 : vector<8x384xf32>
    %12 = arith.truncf %11 : vector<8x384xf32> to vector<8x384xbf16>
    %13 = vector.extract_strided_slice %12 {offsets = [0, 0], sizes = [8, 128], strides = [1, 1]} : vector<8x384xbf16> to vector<8x128xbf16>
    %14 = vector.shape_cast %13 : vector<8x128xbf16> to vector<1x8x128xbf16>
    %15 = vector.extract_strided_slice %12 {offsets = [0, 128], sizes = [8, 128], strides = [1, 1]} : vector<8x384xbf16> to vector<8x128xbf16>
    %16 = vector.shape_cast %15 : vector<8x128xbf16> to vector<1x8x128xbf16>
    %17 = vector.extract_strided_slice %12 {offsets = [0, 256], sizes = [8, 128], strides = [1, 1]} : vector<8x384xbf16> to vector<8x128xbf16>
    %18 = vector.shape_cast %17 : vector<8x128xbf16> to vector<1x8x128xbf16>
    %c0_8 = arith.constant 0 : index
    %c0_9 = arith.constant 0 : index
    %c0_10 = arith.constant 0 : index
    %19 = vector.load %arg3[%c0_8, %c0_9, %c0_10] : memref<1x1x8xf32, #tpu.memory_space<vmem>>, vector<1x1x8xf32>
    %20 = vector.extract_strided_slice %14 {offsets = [0, 0, 0], sizes = [1, 8, 64], strides = [1, 1, 1]} : vector<1x8x128xbf16> to vector<1x8x64xbf16>
    %21 = vector.extract_strided_slice %16 {offsets = [0, 0, 0], sizes = [1, 8, 64], strides = [1, 1, 1]} : vector<1x8x128xbf16> to vector<1x8x64xbf16>
    %22 = vector.extract_strided_slice %18 {offsets = [0, 0, 0], sizes = [1, 8, 64], strides = [1, 1, 1]} : vector<1x8x128xbf16> to vector<1x8x64xbf16>
    "tpu.trace_start"() <{level = 10 : i32, message = "bqd,bkd->bqk"}> : () -> ()
    %cst_11 = arith.constant dense<0.000000e+00> : vector<1x8x8xf32>
    %23 = tpu.matmul %20, %21, %cst_11 {dimension_numbers = #tpu.dot_dimension_numbers<[2], [2], [1], [1], [0, 0, 0, 1, 1, 1], [0], [0]>} : vector<1x8x64xbf16>, vector<1x8x64xbf16>, vector<1x8x8xf32> -> vector<1x8x8xf32>
    "tpu.trace_stop"() : () -> ()
    %cst_12 = arith.constant 1.250000e-01 : f32
    %24 = vector.broadcast %cst_12 : f32 to vector<1x8x8xf32>
    %25 = arith.mulf %23, %24 : vector<1x8x8xf32>
    %26 = vector.broadcast %19 : vector<1x1x8xf32> to vector<1x8x8xf32>
    %27 = arith.addf %25, %26 : vector<1x8x8xf32>
    %cst_13 = arith.constant dense<0xFF800000> : vector<1x8xf32>
    %28 = vector.multi_reduction <maximumf>, %27, %cst_13 [2] : vector<1x8x8xf32> to vector<1x8xf32>
    %29 = vector.shape_cast %28 : vector<1x8xf32> to vector<1x8x1xf32>
    %30 = vector.broadcast %29 : vector<1x8x1xf32> to vector<1x8x8xf32>
    %31 = arith.subf %27, %30 : vector<1x8x8xf32>
    %32 = math.exp %31 : vector<1x8x8xf32>
    %cst_14 = arith.constant dense<0.000000e+00> : vector<1x8xf32>
    %33 = vector.multi_reduction <add>, %32, %cst_14 [2] : vector<1x8x8xf32> to vector<1x8xf32>
    %34 = vector.shape_cast %33 : vector<1x8xf32> to vector<1x8x1xf32>
    %35 = tpu.reciprocal %34 {approx = true} : vector<1x8x1xf32> -> vector<1x8x1xf32>
    %36 = vector.broadcast %35 : vector<1x8x1xf32> to vector<1x8x8xf32>
    %37 = arith.mulf %32, %36 : vector<1x8x8xf32>
    %38 = arith.truncf %37 : vector<1x8x8xf32> to vector<1x8x8xbf16>
    "tpu.trace_start"() <{level = 10 : i32, message = "bqk,bkd->bqd"}> : () -> ()
    %cst_15 = arith.constant dense<0.000000e+00> : vector<1x8x64xf32>
    %39 = tpu.matmul %38, %22, %cst_15 {dimension_numbers = #tpu.dot_dimension_numbers<[2], [1], [1], [2], [0, 0, 0, 1, 1, 2], [0], [0]>} : vector<1x8x8xbf16>, vector<1x8x64xbf16>, vector<1x8x64xf32> -> vector<1x8x64xf32>
    "tpu.trace_stop"() : () -> ()
    %40 = vector.extract_strided_slice %14 {offsets = [0, 0, 64], sizes = [1, 8, 64], strides = [1, 1, 1]} : vector<1x8x128xbf16> to vector<1x8x64xbf16>
    %41 = vector.extract_strided_slice %16 {offsets = [0, 0, 64], sizes = [1, 8, 64], strides = [1, 1, 1]} : vector<1x8x128xbf16> to vector<1x8x64xbf16>
    %42 = vector.extract_strided_slice %18 {offsets = [0, 0, 64], sizes = [1, 8, 64], strides = [1, 1, 1]} : vector<1x8x128xbf16> to vector<1x8x64xbf16>
    "tpu.trace_start"() <{level = 10 : i32, message = "bqd,bkd->bqk"}> : () -> ()
    %cst_16 = arith.constant dense<0.000000e+00> : vector<1x8x8xf32>
    %43 = tpu.matmul %40, %41, %cst_16 {dimension_numbers = #tpu.dot_dimension_numbers<[2], [2], [1], [1], [0, 0, 0, 1, 1, 1], [0], [0]>} : vector<1x8x64xbf16>, vector<1x8x64xbf16>, vector<1x8x8xf32> -> vector<1x8x8xf32>
    "tpu.trace_stop"() : () -> ()
    %cst_17 = arith.constant 1.250000e-01 : f32
    %44 = vector.broadcast %cst_17 : f32 to vector<1x8x8xf32>
    %45 = arith.mulf %43, %44 : vector<1x8x8xf32>
    %46 = vector.broadcast %19 : vector<1x1x8xf32> to vector<1x8x8xf32>
    %47 = arith.addf %45, %46 : vector<1x8x8xf32>
    %cst_18 = arith.constant dense<0xFF800000> : vector<1x8xf32>
    %48 = vector.multi_reduction <maximumf>, %47, %cst_18 [2] : vector<1x8x8xf32> to vector<1x8xf32>
    %49 = vector.shape_cast %48 : vector<1x8xf32> to vector<1x8x1xf32>
    %50 = vector.broadcast %49 : vector<1x8x1xf32> to vector<1x8x8xf32>
    %51 = arith.subf %47, %50 : vector<1x8x8xf32>
    %52 = math.exp %51 : vector<1x8x8xf32>
    %cst_19 = arith.constant dense<0.000000e+00> : vector<1x8xf32>
    %53 = vector.multi_reduction <add>, %52, %cst_19 [2] : vector<1x8x8xf32> to vector<1x8xf32>
    %54 = vector.shape_cast %53 : vector<1x8xf32> to vector<1x8x1xf32>
    %55 = tpu.reciprocal %54 {approx = true} : vector<1x8x1xf32> -> vector<1x8x1xf32>
    %56 = vector.broadcast %55 : vector<1x8x1xf32> to vector<1x8x8xf32>
    %57 = arith.mulf %52, %56 : vector<1x8x8xf32>
    %58 = arith.truncf %57 : vector<1x8x8xf32> to vector<1x8x8xbf16>
    "tpu.trace_start"() <{level = 10 : i32, message = "bqk,bkd->bqd"}> : () -> ()
    %cst_20 = arith.constant dense<0.000000e+00> : vector<1x8x64xf32>
    %59 = tpu.matmul %58, %42, %cst_20 {dimension_numbers = #tpu.dot_dimension_numbers<[2], [1], [1], [2], [0, 0, 0, 1, 1, 2], [0], [0]>} : vector<1x8x8xbf16>, vector<1x8x64xbf16>, vector<1x8x64xf32> -> vector<1x8x64xf32>
    "tpu.trace_stop"() : () -> ()
    %60 = tpu.concatenate %39, %59 in 2 : vector<1x8x64xf32>, vector<1x8x64xf32> -> vector<1x8x128xf32>
    %61 = vector.shape_cast %60 : vector<1x8x128xf32> to vector<8x128xf32>
    %62 = arith.truncf %61 : vector<8x128xf32> to vector<8x128xbf16>
    %c0_21 = arith.constant 0 : index
    %c0_22 = arith.constant 0 : index
    %c0_23 = arith.constant 0 : index
    %63 = vector.load %arg8[%c0_21, %c0_22, %c0_23] : memref<1x128x128xbf16, #tpu.memory_space<vmem>>, vector<1x128x128xbf16>
    %64 = vector.shape_cast %63 : vector<1x128x128xbf16> to vector<128x128xbf16>
    %cst_24 = arith.constant dense<0.000000e+00> : vector<8x128xf32>
    %65 = tpu.matmul %62, %64, %cst_24 {dimension_numbers = #tpu.dot_dimension_numbers<[1], [0], [0], [1], [0, 0, 1, 1], [], []>} : vector<8x128xbf16>, vector<128x128xbf16>, vector<8x128xf32> -> vector<8x128xf32>
    %c0_25 = arith.constant 0 : index
    %c0_26 = arith.constant 0 : index
    %c0_27 = arith.constant 0 : index
    %66 = vector.load %arg9[%c0_25, %c0_26, %c0_27] : memref<1x1x128xf32, #tpu.memory_space<vmem>>, vector<1x1x128xf32>
    %67 = vector.shape_cast %66 : vector<1x1x128xf32> to vector<1x128xf32>
    %68 = vector.broadcast %67 : vector<1x128xf32> to vector<8x128xf32>
    %69 = arith.addf %65, %68 : vector<8x128xf32>
    %70 = arith.addf %69, %3 : vector<8x128xf32>
    %c0_28 = arith.constant 0 : index
    %c0_29 = arith.constant 0 : index
    %c0_30 = arith.constant 0 : index
    %71 = vector.load %arg10[%c0_28, %c0_29, %c0_30] : memref<1x1x128xf32, #tpu.memory_space<vmem>>, vector<1x1x128xf32>
    %72 = vector.shape_cast %71 : vector<1x1x128xf32> to vector<1x128xf32>
    %c0_31 = arith.constant 0 : index
    %c0_32 = arith.constant 0 : index
    %c0_33 = arith.constant 0 : index
    %73 = vector.load %arg11[%c0_31, %c0_32, %c0_33] : memref<1x1x128xf32, #tpu.memory_space<vmem>>, vector<1x1x128xf32>
    %74 = vector.shape_cast %73 : vector<1x1x128xf32> to vector<1x128xf32>
    %cst_34 = arith.constant dense<0.000000e+00> : vector<8xf32>
    %75 = vector.multi_reduction <add>, %70, %cst_34 [1] : vector<8x128xf32> to vector<8xf32>
    %76 = vector.shape_cast %75 : vector<8xf32> to vector<8x1xf32>
    %cst_35 = arith.constant 1.280000e+02 : f32
    %77 = vector.broadcast %cst_35 : f32 to vector<8x1xf32>
    %78 = arith.divf %76, %77 : vector<8x1xf32>
    %79 = vector.broadcast %78 : vector<8x1xf32> to vector<8x128xf32>
    %80 = arith.subf %70, %79 : vector<8x128xf32>
    %81 = arith.mulf %80, %80 : vector<8x128xf32>
    %cst_36 = arith.constant dense<0.000000e+00> : vector<8xf32>
    %82 = vector.multi_reduction <add>, %81, %cst_36 [1] : vector<8x128xf32> to vector<8xf32>
    %83 = vector.shape_cast %82 : vector<8xf32> to vector<8x1xf32>
    %cst_37 = arith.constant 1.280000e+02 : f32
    %84 = vector.broadcast %cst_37 : f32 to vector<8x1xf32>
    %85 = arith.divf %83, %84 : vector<8x1xf32>
    %86 = vector.broadcast %78 : vector<8x1xf32> to vector<8x128xf32>
    %87 = arith.subf %70, %86 : vector<8x128xf32>
    %cst_38 = arith.constant 9.99999996E-13 : f32
    %88 = vector.broadcast %cst_38 : f32 to vector<8x1xf32>
    %89 = arith.addf %85, %88 : vector<8x1xf32>
    %90 = math.rsqrt %89 : vector<8x1xf32>
    %91 = vector.broadcast %90 : vector<8x1xf32> to vector<8x128xf32>
    %92 = arith.mulf %87, %91 : vector<8x128xf32>
    %93 = vector.broadcast %72 : vector<1x128xf32> to vector<8x128xf32>
    %94 = arith.mulf %92, %93 : vector<8x128xf32>
    %95 = vector.broadcast %74 : vector<1x128xf32> to vector<8x128xf32>
    %96 = arith.addf %94, %95 : vector<8x128xf32>
    %97 = arith.truncf %96 : vector<8x128xf32> to vector<8x128xbf16>
    %c0_39 = arith.constant 0 : index
    %c0_40 = arith.constant 0 : index
    %c0_41 = arith.constant 0 : index
    %98 = vector.load %arg12[%c0_39, %c0_40, %c0_41] : memref<1x128x512xbf16, #tpu.memory_space<vmem>>, vector<1x128x512xbf16>
    %99 = vector.shape_cast %98 : vector<1x128x512xbf16> to vector<128x512xbf16>
    %cst_42 = arith.constant dense<0.000000e+00> : vector<8x512xf32>
    %100 = tpu.matmul %97, %99, %cst_42 {dimension_numbers = #tpu.dot_dimension_numbers<[1], [0], [0], [1], [0, 0, 1, 1], [], []>} : vector<8x128xbf16>, vector<128x512xbf16>, vector<8x512xf32> -> vector<8x512xf32>
    %c0_43 = arith.constant 0 : index
    %c0_44 = arith.constant 0 : index
    %c0_45 = arith.constant 0 : index
    %101 = vector.load %arg13[%c0_43, %c0_44, %c0_45] : memref<1x1x512xf32, #tpu.memory_space<vmem>>, vector<1x1x512xf32>
    %102 = vector.shape_cast %101 : vector<1x1x512xf32> to vector<1x512xf32>
    %103 = vector.broadcast %102 : vector<1x512xf32> to vector<8x512xf32>
    %104 = arith.addf %100, %103 : vector<8x512xf32>
    %105 = arith.mulf %104, %104 : vector<8x512xf32>
    %106 = arith.mulf %104, %105 : vector<8x512xf32>
    %cst_46 = arith.constant 4.471500e-02 : f32
    %107 = vector.broadcast %cst_46 : f32 to vector<8x512xf32>
    %108 = arith.mulf %107, %106 : vector<8x512xf32>
    %109 = arith.addf %104, %108 : vector<8x512xf32>
    %cst_47 = arith.constant 0.797884583 : f32
    %110 = vector.broadcast %cst_47 : f32 to vector<8x512xf32>
    %111 = arith.mulf %110, %109 : vector<8x512xf32>
    %112 = math.tanh %111 : vector<8x512xf32>
    %cst_48 = arith.constant 1.000000e+00 : f32
    %113 = vector.broadcast %cst_48 : f32 to vector<8x512xf32>
    %114 = arith.addf %113, %112 : vector<8x512xf32>
    %cst_49 = arith.constant 5.000000e-01 : f32
    %115 = vector.broadcast %cst_49 : f32 to vector<8x512xf32>
    %116 = arith.mulf %115, %114 : vector<8x512xf32>
    %117 = arith.mulf %104, %116 : vector<8x512xf32>
    %118 = arith.truncf %117 : vector<8x512xf32> to vector<8x512xbf16>
    %c0_50 = arith.constant 0 : index
    %c0_51 = arith.constant 0 : index
    %c0_52 = arith.constant 0 : index
    %119 = vector.load %arg14[%c0_50, %c0_51, %c0_52] : memref<1x512x128xbf16, #tpu.memory_space<vmem>>, vector<1x512x128xbf16>
    %120 = vector.shape_cast %119 : vector<1x512x128xbf16> to vector<512x128xbf16>
    %cst_53 = arith.constant dense<0.000000e+00> : vector<8x128xf32>
    %121 = tpu.matmul %118, %120, %cst_53 {dimension_numbers = #tpu.dot_dimension_numbers<[1], [0], [0], [1], [0, 0, 1, 1], [], []>} : vector<8x512xbf16>, vector<512x128xbf16>, vector<8x128xf32> -> vector<8x128xf32>
    %c0_54 = arith.constant 0 : index
    %c0_55 = arith.constant 0 : index
    %c0_56 = arith.constant 0 : index
    %122 = vector.load %arg15[%c0_54, %c0_55, %c0_56] : memref<1x1x128xf32, #tpu.memory_space<vmem>>, vector<1x1x128xf32>
    %123 = vector.shape_cast %122 : vector<1x1x128xf32> to vector<1x128xf32>
    %124 = vector.broadcast %123 : vector<1x128xf32> to vector<8x128xf32>
    %125 = arith.addf %121, %124 : vector<8x128xf32>
    %126 = arith.addf %125, %96 : vector<8x128xf32>
    %c0_57 = arith.constant 0 : index
    %c0_58 = arith.constant 0 : index
    %c0_59 = arith.constant 0 : index
    %127 = vector.load %arg16[%c0_57, %c0_58, %c0_59] : memref<1x1x128xf32, #tpu.memory_space<vmem>>, vector<1x1x128xf32>
    %128 = vector.shape_cast %127 : vector<1x1x128xf32> to vector<1x128xf32>
    %c0_60 = arith.constant 0 : index
    %c0_61 = arith.constant 0 : index
    %c0_62 = arith.constant 0 : index
    %129 = vector.load %arg17[%c0_60, %c0_61, %c0_62] : memref<1x1x128xf32, #tpu.memory_space<vmem>>, vector<1x1x128xf32>
    %130 = vector.shape_cast %129 : vector<1x1x128xf32> to vector<1x128xf32>
    %cst_63 = arith.constant dense<0.000000e+00> : vector<8xf32>
    %131 = vector.multi_reduction <add>, %126, %cst_63 [1] : vector<8x128xf32> to vector<8xf32>
    %132 = vector.shape_cast %131 : vector<8xf32> to vector<8x1xf32>
    %cst_64 = arith.constant 1.280000e+02 : f32
    %133 = vector.broadcast %cst_64 : f32 to vector<8x1xf32>
    %134 = arith.divf %132, %133 : vector<8x1xf32>
    %135 = vector.broadcast %134 : vector<8x1xf32> to vector<8x128xf32>
    %136 = arith.subf %126, %135 : vector<8x128xf32>
    %137 = arith.mulf %136, %136 : vector<8x128xf32>
    %cst_65 = arith.constant dense<0.000000e+00> : vector<8xf32>
    %138 = vector.multi_reduction <add>, %137, %cst_65 [1] : vector<8x128xf32> to vector<8xf32>
    %139 = vector.shape_cast %138 : vector<8xf32> to vector<8x1xf32>
    %cst_66 = arith.constant 1.280000e+02 : f32
    %140 = vector.broadcast %cst_66 : f32 to vector<8x1xf32>
    %141 = arith.divf %139, %140 : vector<8x1xf32>
    %142 = vector.broadcast %134 : vector<8x1xf32> to vector<8x128xf32>
    %143 = arith.subf %126, %142 : vector<8x128xf32>
    %cst_67 = arith.constant 9.99999996E-13 : f32
    %144 = vector.broadcast %cst_67 : f32 to vector<8x1xf32>
    %145 = arith.addf %141, %144 : vector<8x1xf32>
    %146 = math.rsqrt %145 : vector<8x1xf32>
    %147 = vector.broadcast %146 : vector<8x1xf32> to vector<8x128xf32>
    %148 = arith.mulf %143, %147 : vector<8x128xf32>
    %149 = vector.broadcast %128 : vector<1x128xf32> to vector<8x128xf32>
    %150 = arith.mulf %148, %149 : vector<8x128xf32>
    %151 = vector.broadcast %130 : vector<1x128xf32> to vector<8x128xf32>
    %152 = arith.addf %150, %151 : vector<8x128xf32>
    %c0_68 = arith.constant 0 : index
    %c0_69 = arith.constant 0 : index
    %153 = vector.load %arg21[%c0_68, %c0_69] : memref<8x128xf32, #tpu.memory_space<vmem>>, vector<8x128xf32>
    tpu.vector_store %arg21[%c0_68, %c0_69], %152 {strides = array<i32>} : memref<8x128xf32, #tpu.memory_space<vmem>>, vector<8x128xf32>,
    %c1_i32 = arith.constant 1 : i32
    %154 = arith.cmpi eq, %arg1, %c1_i32 : i32
    %155 = arith.extui %154 : i1 to i32
    %c0_i32_70 = arith.constant 0 : i32
    %156 = arith.cmpi ne, %155, %c0_i32_70 : i32
    scf.if %156 {
      %157 = vector.shape_cast %152 : vector<8x128xf32> to vector<1x8x128xf32>
      %158 = vector.extract_strided_slice %157 {offsets = [0, 0, 0], sizes = [1, 1, 128], strides = [1, 1, 1]} : vector<1x8x128xf32> to vector<1x1x128xf32>
      %159 = vector.shape_cast %158 : vector<1x1x128xf32> to vector<1x128xf32>
      %160 = arith.truncf %159 : vector<1x128xf32> to vector<1x128xbf16>
      %c0_71 = arith.constant 0 : index
      %c0_72 = arith.constant 0 : index
      %161 = vector.load %arg18[%c0_71, %c0_72] : memref<128x128xbf16, #tpu.memory_space<vmem>>, vector<128x128xbf16>
      %cst_73 = arith.constant dense<0.000000e+00> : vector<1x128xf32>
      %162 = tpu.matmul %160, %161, %cst_73 {dimension_numbers = #tpu.dot_dimension_numbers<[1], [0], [0], [1], [0, 0, 1, 1], [], []>} : vector<1x128xbf16>, vector<128x128xbf16>, vector<1x128xf32> -> vector<1x128xf32>
      %c0_74 = arith.constant 0 : index
      %c0_75 = arith.constant 0 : index
      %163 = vector.load %arg19[%c0_74, %c0_75] : memref<1x128xf32, #tpu.memory_space<vmem>>, vector<1x128xf32>
      %164 = arith.addf %162, %163 : vector<1x128xf32>
      %165 = math.tanh %164 : vector<1x128xf32>
      %166 = vector.shape_cast %165 : vector<1x128xf32> to vector<1x1x128xf32>
      %c0_76 = arith.constant 0 : index
      %c0_77 = arith.constant 0 : index
      %c0_78 = arith.constant 0 : index
      %167 = vector.load %arg20[%c0_76, %c0_77, %c0_78] : memref<1x1x128xf32, #tpu.memory_space<vmem>>, vector<1x1x128xf32>
      tpu.vector_store %arg20[%c0_76, %c0_77, %c0_78], %166 {strides = array<i32>} : memref<1x1x128xf32, #tpu.memory_space<vmem>>, vector<1x1x128xf32>,
    } else {
    }
    return
  }
  func.func @transform_0(%arg0: i32, %arg1: i32) -> (i32, i32) {
    %c0_i32 = arith.constant 0 : i32
    %c0_i32_0 = arith.constant 0 : i32
    return %arg0, %c0_i32 : i32, i32
  }
  func.func @transform_1(%arg0: i32, %arg1: i32) -> (i32, i32, i32) {
    %c0_i32 = arith.constant 0 : i32
    %c0_i32_0 = arith.constant 0 : i32
    %c0_i32_1 = arith.constant 0 : i32
    return %arg0, %c0_i32, %c0_i32_0 : i32, i32, i32
  }
  func.func @transform_2(%arg0: i32, %arg1: i32) -> (i32, i32) {
    %c0_i32 = arith.constant 0 : i32
    %c0_i32_0 = arith.constant 0 : i32
    %c0_i32_1 = arith.constant 0 : i32
    return %c0_i32, %c0_i32_0 : i32, i32
  }
  func.func @transform_3(%arg0: i32, %arg1: i32) -> (i32, i32) {
    %c0_i32 = arith.constant 0 : i32
    %c0_i32_0 = arith.constant 0 : i32
    %c0_i32_1 = arith.constant 0 : i32
    return %c0_i32, %c0_i32_0 : i32, i32
  }
  func.func @transform_4(%arg0: i32, %arg1: i32) -> (i32, i32, i32) {
    %c0_i32 = arith.constant 0 : i32
    %c0_i32_0 = arith.constant 0 : i32
    %c0_i32_1 = arith.constant 0 : i32
    return %arg1, %c0_i32, %c0_i32_0 : i32, i32, i32
  }
  func.func @transform_5(%arg0: i32, %arg1: i32) -> (i32, i32, i32) {
    %c0_i32 = arith.constant 0 : i32
    %c0_i32_0 = arith.constant 0 : i32
    %c0_i32_1 = arith.constant 0 : i32
    return %arg1, %c0_i32, %c0_i32_0 : i32, i32, i32
  }
  func.func @transform_6(%arg0: i32, %arg1: i32) -> (i32, i32, i32) {
    %c0_i32 = arith.constant 0 : i32
    %c0_i32_0 = arith.constant 0 : i32
    %c0_i32_1 = arith.constant 0 : i32
    return %arg1, %c0_i32, %c0_i32_0 : i32, i32, i32
  }
  func.func @transform_7(%arg0: i32, %arg1: i32) -> (i32, i32, i32) {
    %c0_i32 = arith.constant 0 : i32
    %c0_i32_0 = arith.constant 0 : i32
    %c0_i32_1 = arith.constant 0 : i32
    return %arg1, %c0_i32, %c0_i32_0 : i32, i32, i32
  }
  func.func @transform_8(%arg0: i32, %arg1: i32) -> (i32, i32, i32) {
    %c0_i32 = arith.constant 0 : i32
    %c0_i32_0 = arith.constant 0 : i32
    %c0_i32_1 = arith.constant 0 : i32
    return %arg1, %c0_i32, %c0_i32_0 : i32, i32, i32
  }
  func.func @transform_9(%arg0: i32, %arg1: i32) -> (i32, i32, i32) {
    %c0_i32 = arith.constant 0 : i32
    %c0_i32_0 = arith.constant 0 : i32
    %c0_i32_1 = arith.constant 0 : i32
    return %arg1, %c0_i32, %c0_i32_0 : i32, i32, i32
  }
  func.func @transform_10(%arg0: i32, %arg1: i32) -> (i32, i32, i32) {
    %c0_i32 = arith.constant 0 : i32
    %c0_i32_0 = arith.constant 0 : i32
    %c0_i32_1 = arith.constant 0 : i32
    return %arg1, %c0_i32, %c0_i32_0 : i32, i32, i32
  }
  func.func @transform_11(%arg0: i32, %arg1: i32) -> (i32, i32, i32) {
    %c0_i32 = arith.constant 0 : i32
    %c0_i32_0 = arith.constant 0 : i32
    %c0_i32_1 = arith.constant 0 : i32
    return %arg1, %c0_i32, %c0_i32_0 : i32, i32, i32
  }
  func.func @transform_12(%arg0: i32, %arg1: i32) -> (i32, i32, i32) {
    %c0_i32 = arith.constant 0 : i32
    %c0_i32_0 = arith.constant 0 : i32
    %c0_i32_1 = arith.constant 0 : i32
    return %arg1, %c0_i32, %c0_i32_0 : i32, i32, i32
  }
  func.func @transform_13(%arg0: i32, %arg1: i32) -> (i32, i32, i32) {
    %c0_i32 = arith.constant 0 : i32
    %c0_i32_0 = arith.constant 0 : i32
    %c0_i32_1 = arith.constant 0 : i32
    return %arg1, %c0_i32, %c0_i32_0 : i32, i32, i32
  }
  func.func @transform_14(%arg0: i32, %arg1: i32) -> (i32, i32, i32) {
    %c0_i32 = arith.constant 0 : i32
    %c0_i32_0 = arith.constant 0 : i32
    %c0_i32_1 = arith.constant 0 : i32
    return %arg1, %c0_i32, %c0_i32_0 : i32, i32, i32
  }
  func.func @transform_15(%arg0: i32, %arg1: i32) -> (i32, i32, i32) {
    %c0_i32 = arith.constant 0 : i32
    %c0_i32_0 = arith.constant 0 : i32
    %c0_i32_1 = arith.constant 0 : i32
    return %arg1, %c0_i32, %c0_i32_0 : i32, i32, i32
  }
  func.func @transform_16(%arg0: i32, %arg1: i32) -> (i32, i32) {
    %c0_i32 = arith.constant 0 : i32
    %c0_i32_0 = arith.constant 0 : i32
    %c0_i32_1 = arith.constant 0 : i32
    return %c0_i32, %c0_i32_0 : i32, i32
  }
  func.func @transform_17(%arg0: i32, %arg1: i32) -> (i32, i32) {
    %c0_i32 = arith.constant 0 : i32
    %c0_i32_0 = arith.constant 0 : i32
    %c0_i32_1 = arith.constant 0 : i32
    return %c0_i32, %c0_i32_0 : i32, i32
  }
  func.func @transform_18(%arg0: i32, %arg1: i32) -> (i32, i32, i32) {
    %c0_i32 = arith.constant 0 : i32
    %c0_i32_0 = arith.constant 0 : i32
    %c0_i32_1 = arith.constant 0 : i32
    return %arg0, %c0_i32, %c0_i32_0 : i32, i32, i32
  }
}

</mosaic_0001>

<bundles_post_ra>
// kernel: bert_encode_pallas.1
= control target key start
LH: loop header
LB: loop body
LE: loop exit
PB: predicated region body
PF: predicated region fallthrough
CT: control target
= control target key end

     0   :  { %s4132_s0 = inlined_call_operand.vmem [shape: f32[16,128], index: 0, kind: input, shape index: {}]   ;;  %s4133_s1 = inlined_call_operand.vmem [shape: f32[2,1,8], index: 1, kind: input, shape index: {}]   ;;  %s4134_s2 = inlined_call_operand.vmem [shape: f32[1,128], index: 2, kind: input, shape index: {}]   ;;  %s4135_s3 = inlined_call_operand.vmem [shape: f32[1,128], index: 3, kind: input, shape index: {}]   ;;  %s4136_s4 = inlined_call_operand.hbm [shape: bf16[2,128,384], index: 4, kind: input, shape index: {}]   ;;  %s4137_s5 = inlined_call_operand.vmem [shape: f32[2,1,384], index: 5, kind: input, shape index: {}]   ;;  %s4138_s6 = inlined_call_operand.vmem [shape: bf16[2,128,128], index: 6, kind: input, shape index: {}]   ;;  %s4139_s7 = inlined_call_operand.vmem [shape: f32[2,1,128], index: 7, kind: input, shape index: {}]   ;;  %s4140_s8 = inlined_call_operand.vmem [shape: f32[2,1,128], index: 8, kind: input, shape index: {}]   ;;  %s4141_s9 = inlined_call_operand.vmem [shape: f32[2,1,128], index: 9, kind: input, shape index: {}]   ;;  %s4142_s10 = inlined_call_operand.hbm [shape: bf16[2,128,512], index: 10, kind: input, shape index: {}]   ;;  %s4143_s11 = inlined_call_operand.vmem [shape: f32[2,1,512], index: 11, kind: input, shape index: {}]   ;;  %s4144_s12 = inlined_call_operand.hbm [shape: bf16[2,512,128], index: 12, kind: input, shape index: {}]   ;;  %s4145_s13 = inlined_call_operand.vmem [shape: f32[2,1,128], index: 13, kind: input, shape index: {}]   ;;  %s4146_s14 = inlined_call_operand.vmem [shape: f32[2,1,128], index: 14, kind: input, shape index: {}]   ;;  %s4147_s15 = inlined_call_operand.vmem [shape: f32[2,1,128], index: 15, kind: input, shape index: {}]   ;;  %s4148_s16 = inlined_call_operand.vmem [shape: bf16[128,128], index: 16, kind: input, shape index: {}]   ;;  %s4149_s17 = inlined_call_operand.vmem [shape: f32[1,128], index: 17, kind: input, shape index: {}]   ;;  %s4150_s18 = inlined_call_operand.hbm [shape: f32[2,1,128], index: 18, kind: output, shape index: {}]  }
   0x1   :  { %4171 = sst [smem:[#allocation27_spill]] %s4132_s0 }
   0x2   :  { %4172 = sst [smem:[#allocation28_spill]] %s4133_s1 }
   0x3   :  { %4173 = sst [smem:[#allocation29_spill]] %s4134_s2 }
   0x4   :  { %4174 = sst [smem:[#allocation30_spill]] %s4135_s3 }
   0x5   :  { %4175 = sst [smem:[#allocation31_spill]] %s4136_s4 }
   0x6   :  { %4176 = sst [smem:[#allocation32_spill]] %s4137_s5 }
   0x7   :  { %4177 = sst [smem:[#allocation33_spill]] %s4138_s6 }
   0x8   :  { %4178 = sst [smem:[#allocation34_spill]] %s4139_s7 }
   0x9   :  { %4179 = sst [smem:[#allocation35_spill]] %s4140_s8 }
   0xa   :  { %4180 = sst [smem:[#allocation36_spill]] %s4141_s9 }
   0xb   :  { %4181 = sst [smem:[#allocation37_spill]] %s4142_s10 }
   0xc   :  { %4182 = sst [smem:[#allocation38_spill]] %s4143_s11 }
   0xd   :  { %4183 = sst [smem:[#allocation39_spill]] %s4144_s12 }
   0xe   :  { %4184 = sst [smem:[#allocation40_spill]] %s4145_s13 }
   0xf   :  { %4185 = sst [smem:[#allocation41_spill]] %s4146_s14 }
  0x10   :  { %4186 = sst [smem:[#allocation42_spill]] %s4147_s15 }
  0x11   :  { %4187 = sst [smem:[#allocation43_spill]] %s4148_s16 }
  0x12   :  { %4188 = sst [smem:[#allocation44_spill]] %s4149_s17 }
  0x13   :  { %4189 = sst [smem:[#allocation45_spill]] %s4150_s18 }
  0x14   :  { %23 = vsyncpa [#allocation4], 0 }
  0x15   :  { %25 = vsyncpa [#allocation4 + $0x1], 0 }
  0x16   :  { %26 = vsyncpa [#allocation7], 0 }
  0x17   :  { %28 = vsyncpa [#allocation7 + $0x1], 0 }
  0x18   :  { %29 = vsyncpa [#allocation5], 0 }
  0x19   :  { %31 = vsyncpa [#allocation5 + $0x1], 0  ;;  %s3506_s27 = smov 0   ;;  %s3508_s28 = smov 0  }
  0x1a   :  { %s3510_s29 = smov 0   ;;  %s3512_s30 = smov 0  }
  0x1b   :  { %s3514_s0 = smov 0   ;;  %s3516_s19 = smov 0  }
  0x1c   :  { %s3518_s1 = smov 0   ;;  %s3520_s20 = smov 0  }
  0x1d   :  { %s3522_s21 = smov 0   ;;  %s3524_s22 = smov 0  }
  0x1e   :  { %s3526_s2 = smov 0  }
  0x1f LB: > { %4190 = sst [smem:[#allocation13_spill]] %s3353_s27  ;;  %s3560_s23 = sadd.s32 4294967295, %s3393_s2   ;;  %s3393_s2 = sphi %s3526_s2, %s37_s2   ;;  %s3389_s22 = sphi %s3524_s22, %s4261_s22   ;;  %s3385_s21 = sphi %s3522_s21, %s4260_s21   ;;  %s3381_s20 = sphi %s3520_s20, %s4259_s20   ;;  %s3377_s1 = sphi %s3518_s1, %s4258_s1   ;;  %s3373_s19 = sphi %s3516_s19, %s4257_s19   ;;  %s3369_s0 = sphi %s3514_s0, %s4256_s0   ;;  %s3365_s30 = sphi %s3512_s30, %s4255_s30   ;;  %s3361_s29 = sphi %s3510_s29, %s4254_s29   ;;  %s3357_s28 = sphi %s3508_s28, %s4263_s28   ;;  %s3353_s27 = sphi %s3506_s27, %s4262_s27  }
  0x20   : > { %4191 = sst [smem:[#allocation14_spill]] %s3361_s29  ;;  %s2592_s24 = sadd.s32 4294967294, %s3393_s2  }
  0x21   : > { %4192 = sst [smem:[#allocation15_spill]] %s3369_s0  ;;  %s46_s25 = sadd.s32 1, %s3385_s21 }
  0x22   : > { %4193 = sst [smem:[#allocation16_spill]] %s3373_s19  ;;  %s49_s26 = sadd.s32 1, %s3389_s22 }
  0x23   : > { %4194 = sst [smem:[#allocation17_spill]] %s3381_s20  ;;  %p47_p0 = scmp.ge.s32.totalorder %s46_s25, 2 }
  0x24   : > { %4195 = sst [smem:[#allocation18_spill]] %s3385_s21  ;;  %s150_s18 = sadd.s32 1, %s3373_s19 }
  0x25   : > { %4196 = sst [smem:[#allocation19_spill]] %s3389_s22  ;;  %p157_p1 = scmp.ne.s32.totalorder %s3373_s19, %s3369_s0 }
  0x26   : > { %4197 = sst [smem:[#allocation20_spill]] %s3393_s2  ;;  %p158_p2 = scmp.eq.s32.totalorder %s3393_s2, 0 }
  0x27   : > { %s4265_s25 = smov (%p47_p0, %s46_s25), 0  ;;  %s4267_s26 = smov (!%p47_p0, %s49_s26), %s3389_s22 }
  0x28   : > { %4198 = sst [smem:[#allocation21_spill]] %s4265_s25  ;;  %s147_s17 = ssub.s32 %s3385_s21, %s4265_s25 }
  0x29   : > { %p3574_p3 = por %p158_p2, %p157_p1  ;;  %p51_p4 = scmp.ge.s32.totalorder %s4267_s26, 2 }
  0x2a   : > { %p148_p5 = scmp.eq.s32.totalorder %s147_s17, 0  ;;  %p163_p6 = scmp.ne.s32.totalorder %s3369_s0, %s3365_s30 }
  0x2b   : > { %p164_p7 = scmp.eq.s32.totalorder %s3560_s23, 0  ;;  %s4269_s26 = smov (%p51_p4, %s4267_s26), 0 }
  0x2c   : > { %4200 = sst [smem:[#allocation22_spill]] %s4269_s26  ;;  %s501_s15 = ssub.s32 %s3389_s22, %s4269_s26 }
  0x2d   : > { %s3583_s3 = scalar_select %p148_p5, %s3373_s19, %s150_s18  }
  0x2e   : > { %p3585_p8 = por %p164_p7, %p163_p6  ;;  %p502_p9 = scmp.eq.s32.totalorder %s501_s15, 0 }
  0x2f   : > { %4201 = sst [smem:[#allocation23_spill]] %s3583_s3  ;;  %s504_s14 = sadd.s32 1, %s3361_s29 }
  0x30   : > { %s4202_s25 = scalar_select %p3585_p8, 1, 0 }
  0x31   : > { %p514_p10 = scmp.ne.s32.totalorder %s3361_s29, %s3357_s28  ;;  %p515_p11 = scmp.eq.s32.totalorder %s3560_s23, 3 }
  0x32   : > { %s3596_s17 = scalar_select %p502_p9, %s3361_s29, %s504_s14  }
  0x33   : > { %p3598_p12 = por %p515_p11, %p514_p10  ;;  %p520_p13 = scmp.ne.s32.totalorder %s3357_s28, %s3353_s27 }
  0x34   : > { %4203 = sst [smem:[#allocation24_spill]] %s3596_s17  ;;  %p521_p0 = scmp.eq.s32.totalorder %s2592_s24, 3 }
  0x35   : > { %s4204_s30 = scalar_select %p3598_p12, 1, 0 }
  0x36   : > { %p2923_p1 = scmp.lt.s32.totalorder %s3393_s2, 4  ;;  %s3606_s18 = sand.u32 1, %s3373_s19  }
  0x37   : > { %4205 = sst [smem:[#allocation25_spill]] %s4204_s30  ;;  %p3608_p2 = por %p521_p0, %p520_p13 }
  0x38   : > { %s620_s15 = sand.u32 1, %s3393_s2   ;;  %p3615_p4 = pnand %p2923_p1, %p3574_p3 }
  0x39   : > { %s4206_s26 = scalar_select %p3608_p2, 1, 0 }
  0x3a   : > { %s4162_s22 = sshll.u32 %s3606_s18, 8  ;;  %s4163_s3 = sshll.u32 %s3385_s21, 12 }
  0x3b   : > { %4207 = sst [smem:[#allocation26_spill]] %s4206_s26  ;;  %s4209_s10 = sld [smem:[#allocation37_spill]] }
  0x3c   : > { %s624_s29 = scalar_lea.vmem [#allocation6], %s4162_s22  ;;  %s3632_s26 = scalar_lea.sflag [#allocation7], %s620_s15 }
  0x3d   : > { %s631_s16 = sshll.u32 %s624_s29, 4  ;;  %p3638_p5 = pneg %p3615_p4  ;;  %s3630_s16 = int_to_ptr.vmem [resolvable:$true] %s631_s16 }
  0x41   : > { %s3626_s19 = scalar_lea.hbm %s4209_s10, %s4163_s3  ;;  %s3182_s22 = scalar_lea.hbm %s4209_s10, 8192 }
  0x42   : > { %s3177_s27 = scalar_lea.hbm %s3626_s19, 4096  ;;  %p3183_p9 = scmp.lt.u32.totalorder %s3626_s19, %s4209_s10 }
  0x43   : > { %p3178_p3 = scmp.ne.s32.totalorder %s3626_s19, %s3177_s27  ;;  %p3184_p10 = scmp.lt.u32.totalorder %s3182_s22, %s3177_s27 }
  0x44   : > { %p3186_p13 = scmp.lt.u32.totalorder %s3177_s27, %s3626_s19 }
  0x45   : > { %p3180_p6 = pnand %p3638_p5, %p3178_p3  ;;  %p3185_p11 = por %p3184_p10, %p3183_p9 }
  0x47   : > { %p3181_p7 = pneg %p3180_p6  ;;  %p3187_p0 = por %p3186_p13, %p3185_p11 }
  0x49   : > { %p3188_p1 = pnand %p3187_p0, %p3181_p7 }
  0x4b   : > { %3191 = shalt.err (!%p3188_p1)
}
  0x4c   : > { %s3192_s15 = scalar_lea.vmem %s3630_s16, 4096  ;;  %s3395_s17 = smov [#allocation6]  }
  0x4d   : > { %p3193_p3 = scmp.ne.s32.totalorder %s3630_s16, %s3192_s15  ;;  %s3197_s24 = sshll.u32 %s3395_s17, 4  ;;  %s3198_s24 = int_to_ptr.vmem [resolvable:$false] %s3197_s24 }
  0x4e   : > { %s3199_s3 = scalar_lea.vmem %s3198_s24, 8192  ;;  %p3200_p12 = scmp.lt.s32.totalorder %s3630_s16, %s3198_s24 }
  0x4f   : > { %p3195_p6 = pnand %p3193_p3, %p3638_p5  ;;  %p3201_p8 = scmp.lt.s32.totalorder %s3199_s3, %s3192_s15 }
  0x51   : > { %p3196_p2 = pneg %p3195_p6  ;;  %p3202_p9 = por %p3201_p8, %p3200_p12 }
  0x53   : > { %p3203_p10 = pnand %p3202_p9, %p3196_p2 }
  0x55   : > { %3206 = shalt.err (!%p3203_p10)
}
  0x56   : > { %s3396_s27 = smov 256   ;;  %s3397_s22 = smov 16  }
  0x57   : > { %2915 = dma.hbm_to_vmem [thread:$0]  (!%p3615_p4), %s3626_s19, 4096, %s3630_s16, %s3632_s26, %s3396_s27, %s3396_s27, %s3397_s22  }
  0x58   : > { %s4211_s29 = sshll.u32 %s3385_s21, 12  ;;  %s4212_s12 = sld [smem:[#allocation39_spill]] }
  0x59   : > { %s4213_s3 = sshll.u32 %s3606_s18, 8  ;;  %p2602_p8 = scmp.ge.s32.totalorder %s3393_s2, 1 }
  0x5a   : > { %s652_s10 = scalar_lea.vmem [#allocation8], %s4213_s3  ;;  %p685_p12 = scmp.lt.s32.totalorder %s3393_s2, 5 }
  0x5b   : > { %s659_s11 = sshll.u32 %s652_s10, 4  ;;  %s2897_s9 = smul.u32 192, %s3606_s18  ;;  %s3671_s11 = int_to_ptr.vmem [resolvable:$true] %s659_s11 }
  0x5c   : > { %p3675_p2 = pnand %p2602_p8, %p685_p12  ;;  %s2898_s19 = smul.u32 3072, %s3385_s21 }
  0x5d   : > { %s4215_s4 = sld [smem:[#allocation31_spill]]  ;;  %s570_s10 = scalar_lea.vmem [#allocation3], %s2897_s9 }
  0x5e   : > { %s3667_s24 = scalar_lea.hbm %s4212_s12, %s4211_s29  ;;  %s577_s29 = sshll.u32 %s570_s10, 4  ;;  %s3686_s29 = int_to_ptr.vmem [resolvable:$true] %s577_s29 }
  0x5f   : > { %s4214_s13 = scalar_select %p3675_p2, 1, 0 }
  0x60   : > { %s567_s15 = scalar_lea.sflag [#allocation4], %s3606_s18 }
  0x63   : > { %s3684_s22 = scalar_lea.hbm %s4215_s4, %s2898_s19  ;;  %s3212_s16 = scalar_lea.hbm %s4215_s4, 6144 }
  0x64   : > { %s3207_s17 = scalar_lea.hbm %s3684_s22, 3072  ;;  %p3213_p0 = scmp.lt.u32.totalorder %s3684_s22, %s4215_s4 }
  0x65   : > { %p3208_p7 = scmp.ne.s32.totalorder %s3684_s22, %s3207_s17  ;;  %p3214_p1 = scmp.lt.u32.totalorder %s3212_s16, %s3207_s17 }
  0x66   : > { %p3216_p6 = scmp.lt.u32.totalorder %s3207_s17, %s3684_s22 }
  0x67   : > { %p3210_p11 = pnand %p3208_p7, %p3638_p5  ;;  %p3215_p3 = por %p3214_p1, %p3213_p0 }
  0x69   : > { %p3211_p13 = pneg %p3210_p11  ;;  %p3217_p9 = por %p3216_p6, %p3215_p3 }
  0x6b   : > { %p3218_p10 = pnand %p3217_p9, %p3211_p13 }
  0x6d   : > { %3221 = shalt.err (!%p3218_p10)
}
  0x6e   : > { %s3222_s9 = scalar_lea.vmem %s3686_s29, 3072  ;;  %s3398_s21 = smov [#allocation3]  }
  0x6f   : > { %p3223_p8 = scmp.ne.s32.totalorder %s3686_s29, %s3222_s9  ;;  %s3227_s10 = sshll.u32 %s3398_s21, 4  ;;  %s3228_s10 = int_to_ptr.vmem [resolvable:$false] %s3227_s10 }
  0x70   : > { %s3229_s3 = scalar_lea.vmem %s3228_s10, 6144  ;;  %p3230_p11 = scmp.lt.s32.totalorder %s3686_s29, %s3228_s10 }
  0x71   : > { %p3225_p12 = pnand %p3223_p8, %p3638_p5  ;;  %p3231_p2 = scmp.lt.s32.totalorder %s3229_s3, %s3222_s9 }
  0x73   : > { %p3226_p7 = pneg %p3225_p12  ;;  %p3232_p0 = por %p3231_p2, %p3230_p11 }
  0x75   : > { %p3233_p1 = pnand %p3232_p0, %p3226_p7 }
  0x77   : > { %3236 = shalt.err (!%p3233_p1)
}
  0x78   : > { %s3399_s17 = smov 192   ;;  %s3400_s16 = smov 12  }
  0x79   : > { %2912 = dma.hbm_to_vmem [thread:$0]  (!%p3615_p4), %s3684_s22, 3072, %s3686_s29, %s567_s15, %s3399_s17, %s3399_s17, %s3400_s16  }
  0x7a   : > { %s3237_s19 = scalar_lea.hbm %s3667_s24, 4096  ;;  %s3242_s21 = scalar_lea.hbm %s4212_s12, 8192 }
  0x7b   : > { %p3238_p13 = scmp.ne.s32.totalorder %s3667_s24, %s3237_s19  ;;  %p3243_p6 = scmp.lt.u32.totalorder %s3667_s24, %s4212_s12 }
  0x7c   : > { %p3244_p9 = scmp.lt.u32.totalorder %s3242_s21, %s3237_s19  ;;  %p3246_p8 = scmp.lt.u32.totalorder %s3237_s19, %s3667_s24 }
  0x7d   : > { %p3240_p2 = pnand %p3238_p13, %p3638_p5 }
  0x7e   : > { %p3245_p10 = por %p3244_p9, %p3243_p6 }
  0x7f   : > { %p3241_p3 = pneg %p3240_p2 }
  0x80   : > { %p3247_p12 = por %p3246_p8, %p3245_p10 }
  0x82   : > { %p3248_p7 = pnand %p3247_p12, %p3241_p3 }
  0x84   : > { %3251 = shalt.err (!%p3248_p7)
}
  0x85   : > { %s3252_s18 = scalar_lea.vmem %s3671_s11, 4096  ;;  %s3401_s22 = smov [#allocation8]  }
  0x86   : > { %p3253_p11 = scmp.ne.s32.totalorder %s3671_s11, %s3252_s18  ;;  %s3257_s29 = sshll.u32 %s3401_s22, 4  ;;  %s3258_s29 = int_to_ptr.vmem [resolvable:$false] %s3257_s29 }
  0x87   : > { %s3259_s15 = scalar_lea.vmem %s3258_s29, 8192  ;;  %p3260_p13 = scmp.lt.s32.totalorder %s3671_s11, %s3258_s29 }
  0x88   : > { %p3255_p0 = pnand %p3253_p11, %p3638_p5  ;;  %p3261_p2 = scmp.lt.s32.totalorder %s3259_s15, %s3252_s18 }
  0x8a   : > { %p3256_p1 = pneg %p3255_p0  ;;  %p3262_p6 = por %p3261_p2, %p3260_p13 }
  0x8c   : > { %p3263_p9 = pnand %p3262_p6, %p3256_p1 }
  0x8e   : > { %3266 = shalt.err (!%p3263_p9)
}
  0x8f   : > { %s3402_s17 = smov 64   ;;  %s3403_s16 = smov 4  }
  0x90   : > { %2918 = dma.hbm_to_vmem [thread:$0]  (!%p3615_p4), %s3667_s24, 4096, %s3671_s11, %s3632_s26, %s3402_s17, %s3402_s17, %s3403_s16  }
  0x91   : > { %p4216_p5 = scmp.ne.s32.totalorder %s4214_s13, 0 }
  0x92   : > { %s3737_s30 = sand.u32 (!%p4216_p5), 1, %s3369_s0   ;;  %p4217_p3 = scmp.ne.s32.totalorder (!%p4216_p5), %s4202_s25, 0 }
  0x93   : > { %689 = sbr.rel (%p4216_p5) target bundleno = 3707 (0xe7b), region = 92  ;;  %s692_s27 = scalar_lea.sflag (!%p4216_p5), [#allocation4], %s3737_s30 }
  0x94   : > { %s2899_s19 = smul.u32 (!%p4216_p5), 192, %s3737_s30 }
  0x96   : > { %s3741_s9 = scalar_lea.vmem (!%p4216_p5), [#allocation3], %s2899_s19 }
  0x9a   : > { %3340 = dma.done.wait (%p4217_p3), %s692_s27, 3072  }
  0x9b   : > { %3342 = vsyncadd (%p4217_p3), %s692_s27, 4294964224  ;;  %s700_s11 = sand.u32 1, %s3560_s23   ;;  %s2603_s13 = sshll.u32 %s3737_s30, 8 }
  0x9c   : > { %s701_s26 = scalar_lea.sflag [#allocation7], %s700_s11  ;;  %s3749_s14 = scalar_lea.vmem [#allocation6], %s2603_s13 }
  0x9d   : > { %3344 = dma.done.wait (%p4217_p3), %s701_s26, 8192  }
  0x9e   : > { %3346 = vsyncadd (%p4217_p3), %s701_s26, 4294959104  ;;  %p813_p4 = scmp.lt.s32.totalorder %s3381_s20, 1  ;;  %p820_p10 = scmp.lt.s32.totalorder %s3377_s1, 1 }
  0x9f   : > { %s4219_s17 = sld [smem:[#allocation27_spill]]  ;;  %s4221_s5 = sld [smem:[#allocation32_spill]] }
  0xa0   : > { %s3759_s21 = scalar_select %p813_p4, %s3381_s20, 1 }
  0xa1   : > { %s3762_s23 = scalar_select %p820_p10, %s3377_s1, 1 }
  0xa2   : > { %s2605_s25 = sshll.u32 %s3759_s21, 3  ;;  %s4222_s6 = sld [smem:[#allocation33_spill]] }
  0xa3   : > { %s2900_s30 = smul.u32 3, %s3762_s23  ;;  %s2733_s19 = sshll.u32 %s3762_s23, 6 }
  0xa4   : > { %s2608_s27 = sshll.u32 %s3762_s23, 2  ;;  %s4225_s20 = sld [smem:[#allocation40_spill]] }
  0xa5   : > { %s816_s16 = scalar_lea.vmem %s4219_s17, %s2605_s25  ;;  %s3781_s12 = scalar_lea.vmem %s4221_s5, %s2900_s30 }
  0xa6   : > { %s4224_s17 = sld [smem:[#allocation36_spill]]  ;;  %s4226_s5 = sld [smem:[#allocation38_spill]] }
  0xa7   : > { %s4228_s25 = sld [smem:[#allocation42_spill]]  ;;  %s3814_s29 = scalar_lea.vmem [#allocation8], %s2603_s13 }
  0xa8   : > { %s3786_s10 = scalar_lea.vmem %s4222_s6, %s2733_s19  ;;  %s4227_s19 = sld [smem:[#allocation41_spill]] }
  0xa9   : > { %s4229_s15 = sand.u32 1, %s3357_s28   ;;  %p2609_p8 = scmp.ne.s32.totalorder %s3377_s1, 0 }
  0xaa   : > { %s844_s4 = scalar_lea.vmem %s4225_s20, %s3762_s23  ;;  %v856_v0 = vld [vmem:[%s816_s16] sm:$0xff] (!%p2609_p8)  ;;  %s4230_s13 = sld [smem:[#allocation29_spill]] (!%p2609_p8) }
  0xab   : > { %855 = sbr.rel (%p2609_p8) target bundleno = 483 (0x1e3), region = 108  ;;  %859 = vadd.xlane.f32.xlu0 (!%p2609_p8), %v856_v0 }
  0xac   : > { %s837_s22 = scalar_lea.vmem %s4224_s17, %s3762_s23  ;;  %s3804_s7 = scalar_lea.vmem %s4226_s5, %s2608_s27 }
  0xad   : > { %s850_s8 = scalar_lea.vmem %s4228_s25, %s3762_s23  ;;  %s3818_s17 = scalar_lea.vmem [#allocation9], %s4229_s15 }
  0xae   : > { %s847_s6 = scalar_lea.vmem %s4227_s19, %s3762_s23  ;;  %s4231_s27 = sld [smem:[#allocation30_spill]] (!%p2609_p8) }
  0xb0   : > { %v2610_v9 = vld [vmem:[%s4230_s13] ss:$0 sm:$0xff] (!%p2609_p8) }
  0xb4   : > { %v2611_v11 = vld [vmem:[%s4231_s27] ss:$0 sm:$0xff] }
 0x138   : > { %v860_v1 = vpop.xlane.xlu0 %859 }
 0x139   : > { %v862_v2 = vmul.f32 0.0078125, %v860_v1 }
 0x13b   : > { %v863_v3 = vsub.f32 %v856_v0, %v862_v2 }
 0x13d   : > { %v864_v4 = vmul.f32 %v863_v3, %v863_v3 }
 0x13f   : > { %865 = vadd.xlane.f32.xlu0 %v864_v4 }
 0x1cc   : > { %v866_v5 = vpop.xlane.xlu0 %865 }
 0x1cd   : > { %v867_v6 = vmul.f32 0.0078125, %v866_v5 }
 0x1cf   : > { %v868_v7 = vadd.f32 1e-12, %v867_v6 }
 0x1d1   : > { %3025 = vrsqrt.f32 %v868_v7 }
 0x1db   : > { %v3026_v8 = vpop.eup %3025 }
 0x1dc   : > { %v870_v10 = vmul.f32 %v3026_v8, %v863_v3 }
 0x1de   : > { %v877_v12 = vmul.f32 %v2610_v9, %v870_v10 }
 0x1e0   : > { %v884_v13 = vadd.f32 %v2611_v11, %v877_v12 }
 0x1e2   : > { %885 = vst [vmem:[#allocation2] sm:$0xff] %v884_v13 }
 0x1e3 PF: > { %v3027_v14 = vld [vmem:[%s3741_s9 + $0x4] ss:$12 sps:$4 sm:$0xff]   ;;  %v3029_v15 = vld [vmem:[%s3741_s9] ss:$12 sps:$4 sm:$0xff]   ;;  %v3404_v16 = vmov 0   ;;  %v3405_v17 = vmov 0.0   ;;  %v922_v42 = vlaneseq }
 0x1e4   : > { %1097 = vmatprep.mubr.bf16.mxu0 %v3404_v16  ;;  %2813 = vmatprep.subr.bf16.mxu1 %v3405_v17  ;;  %v3030_v18 = vld [vmem:[%s3741_s9 + $0x1c] ss:$12 sps:$4 sm:$0xff]   ;;  %v3032_v19 = vld [vmem:[%s3741_s9 + $0x18] ss:$12 sps:$4 sm:$0xff]   ;;  %v3033_v20 = vld [vmem:[%s3741_s9 + $0x34] ss:$12 sps:$4 sm:$0xff]  }
 0x1e5   : > { %1065 = vmatprep.subr.bf16.mxu0 %v3027_v14  ;;  %v3035_v21 = vld [vmem:[%s3741_s9 + $0x30] ss:$12 sps:$4 sm:$0xff]   ;;  %v3036_v22 = vld [vmem:[%s3741_s9 + $0x4c] ss:$12 sps:$4 sm:$0xff]   ;;  %v3038_v23 = vld [vmem:[%s3741_s9 + $0x48] ss:$12 sps:$4 sm:$0xff]  }
 0x1e6   : > { %1066 = vmatpush1.bf16.msra.mxu0 %v3029_v15  ;;  %v3051_v24 = vld [vmem:[%s3741_s9 + $0x8] ss:$12 sps:$4 sm:$0xff]   ;;  %v3039_v25 = vld [vmem:[%s3741_s9 + $0x64] ss:$12 sps:$4 sm:$0xff]   ;;  %v3052_v26 = vld [vmem:[%s3741_s9 + $0x20] ss:$12 sps:$4 sm:$0xff]  }
 0x1e7   : > { %1067 = vmatprep.subr.bf16.mxu0 %v3030_v18  ;;  %2814 = vmatpush3.bf16.msra.mxu1 %v3051_v24  ;;  %v3041_v27 = vld [vmem:[%s3741_s9 + $0x60] ss:$12 sps:$4 sm:$0xff]   ;;  %v3042_v28 = vld [vmem:[%s3741_s9 + $0x7c] ss:$12 sps:$4 sm:$0xff]   ;;  %v3044_v29 = vld [vmem:[%s3741_s9 + $0x78] ss:$12 sps:$4 sm:$0xff]  }
 0x1e8   : > { %2815 = vmatprep.subr.bf16.mxu1 %v3405_v17  ;;  %v3053_v30 = vld [vmem:[%s3741_s9 + $0x38] ss:$12 sps:$4 sm:$0xff]   ;;  %v3045_v31 = vld [vmem:[%s3741_s9 + $0x94] ss:$12 sps:$4 sm:$0xff]   ;;  %v3054_v32 = vld [vmem:[%s3741_s9 + $0x50] ss:$12 sps:$4 sm:$0xff]  }
 0x1e9   : > { %v3047_v33 = vld [vmem:[%s3741_s9 + $0x90] ss:$12 sps:$4 sm:$0xff]   ;;  %v3048_v34 = vld [vmem:[%s3741_s9 + $0xac] ss:$12 sps:$4 sm:$0xff]   ;;  %v3055_v35 = vld [vmem:[%s3741_s9 + $0x68] ss:$12 sps:$4 sm:$0xff]  }
 0x1ea   : > { %1068 = vmatpush1.bf16.msra.mxu0 %v3032_v19  ;;  %v3050_v36 = vld [vmem:[%s3741_s9 + $0xa8] ss:$12 sps:$4 sm:$0xff]   ;;  %v3853_v37 = vld [vmem:[#allocation2] sm:$0xff]  ;;  %v3056_v38 = vld [vmem:[%s3741_s9 + $0x80] ss:$12 sps:$4 sm:$0xff]   ;;  %vm3406_vm0 = vmmov 0  }
 0x1eb   : > { %1069 = vmatprep.subr.bf16.mxu0 %v3033_v20  ;;  %2816 = vmatpush3.bf16.msra.mxu1 %v3052_v26  ;;  %v887_v39 = vpack.c.bf16 %v3853_v37, %v3853_v37  ;;  %v3057_v40 = vld [vmem:[%s3741_s9 + $0x98] ss:$12 sps:$4 sm:$0xff]   ;;  %v3058_v41 = vld [vmem:[%s3741_s9 + $0xb0] ss:$12 sps:$4 sm:$0xff]   ;;  %v3872_v43 = vshrl.u32 %v922_v42, 7  ;;  %vm1150_vm1 = vcmask 523264  }
 0x1ec   : > { %2817 = vmatprep.subr.bf16.mxu1 %v3405_v17  ;;  %2829 = vmatprep.mubr.msk.bf16.mxu1 %vm3406_vm0, %v3405_v17  ;;  %v920_v45 = vld [vmem:[%s3781_s12] sm:$0x7]  ;;  %s3407_s9 = smov 64   ;;  %vm1221_vm2 = vcmask 1043456   ;;  %s4232_s11 = sld [smem:[#allocation28_spill]]  ;;  %vm1205_vm3 = vcmask 64512  }
 0x1ed   : > { %v928_v44 = vsub.s32 1, %v3872_v43  ;;  %v924_v46 = vsub.s32 0, %v3872_v43  ;;  %v932_v58 = vsub.s32 2, %v3872_v43  ;;  %s4234_s30 = sld [smem:[#allocation34_spill]]  ;;  %s4236_s3 = sld [smem:[#allocation35_spill]] }
 0x1ee   : > { %1070 = vmatpush1.bf16.msra.mxu0 %v3035_v21  ;;  %p2719_p12 = scmp.ne.s32.totalorder %s3377_s1, 1 }
 0x1ef   : > { %1071 = vmatprep.subr.bf16.mxu0 %v3036_v22  ;;  %2818 = vmatpush3.bf16.msra.mxu1 %v3053_v30  ;;  %v929_v47 = vrot.slane %v920_v45, %v928_v44  ;;  %v925_v48 = vrot.slane %v920_v45, %v924_v46  ;;  %v933_v59 = vrot.slane %v920_v45, %v932_v58  ;;  %s4242_s16 = sld [smem:[#allocation43_spill]] (!%p2719_p12)  ;;  %vm3409_vm4 = vmmov (!%p2719_p12), 0   ;;  %s4243_s5 = sld [smem:[#allocation44_spill]] (!%p2719_p12) }
 0x1f0   : > { %2819 = vmatprep.subr.bf16.mxu1 %v3405_v17 }
 0x1f2   : > { %1072 = vmatpush1.bf16.msra.mxu0 %v3038_v23  ;;  %s4233_s24 = scalar_lea.vmem %s4232_s11, %s3759_s21 }
 0x1f3   : > { %1073 = vmatprep.subr.bf16.mxu0 %v3039_v25  ;;  %2820 = vmatpush3.bf16.msra.mxu1 %v3054_v32  ;;  %v2637_v4 = vld [vmem:[%s4233_s24] ss:$0 sm:$0xff]  ;;  %s4235_s0 = scalar_lea.vmem %s4234_s30, %s3762_s23  ;;  %s4237_s18 = scalar_lea.vmem %s4236_s3, %s3762_s23 }
 0x1f4   : > { %2821 = vmatprep.subr.bf16.mxu1 %v3405_v17 }
 0x1f6   : > { %1074 = vmatpush1.bf16.msra.mxu0 %v3041_v27 }
 0x1f7   : > { %1075 = vmatprep.subr.bf16.mxu0 %v3042_v28  ;;  %2822 = vmatpush3.bf16.msra.mxu1 %v3055_v35 }
 0x1f8   : > { %2823 = vmatprep.subr.bf16.mxu1 %v3405_v17 }
 0x1fa   : > { %1076 = vmatpush1.bf16.msra.mxu0 %v3044_v29 }
 0x1fb   : > { %1077 = vmatprep.subr.bf16.mxu0 %v3045_v31  ;;  %2824 = vmatpush3.bf16.msra.mxu1 %v3056_v38 }
 0x1fc   : > { %2825 = vmatprep.subr.bf16.mxu1 %v3405_v17 }
 0x1fe   : > { %1078 = vmatpush1.bf16.msra.mxu0 %v3047_v33 }
 0x1ff   : > { %1079 = vmatprep.subr.bf16.mxu0 %v3048_v34  ;;  %2826 = vmatpush3.bf16.msra.mxu1 %v3057_v40 }
 0x200   : > { %2827 = vmatprep.subr.bf16.mxu1 %v3405_v17 }
 0x202   : > { %1080 = vmatpush1.bf16.msra.mxu0 %v3050_v36 }
 0x203   : > { %2857 = vmatprep.subr.bf16.mxu0 %v3405_v17  ;;  %2828 = vmatpush3.bf16.msra.mxu1 %v3058_v41 }
 0x204   : > { %2833 = vmatprep.subr.bf16.mxu1 %v3405_v17 }
 0x205   : > { %1098 = vmatmul.mubr.bf16.vlgmr.msra.gmra.mrb[0].mxu0 %v887_v39 }
 0x206   : > { %2873 = vmatprep.mubr.msk.bf16.mxu0 %vm3406_vm0, %v3405_v17  ;;  %2830 = vmatmul.mubr.bf16.vlgmr.msra.gmra.mrb[0].mxu1 %v887_v39 }
 0x207   : > { %2835 = vmatprep.mubr.msk.bf16.mxu1 %vm3406_vm0, %v3405_v17 }
 0x2d8   : > { %v1099_v49 = vpop.f32.mrb[0].mxu0 }
 0x2d9   : > { %v1101_v50 = vpop.f32.mrb[1].mxu0  ;;  %v1100_v54 = vadd.f32 %v1099_v49, %v925_v48  ;;  %v1140_v60 = vpop.f32.mrb[0].mxu1 }
 0x2da   : > { %v1102_v51 = vadd.f32 %v1101_v50, %v929_v47  ;;  %v1103_v52 = vpop.f32.mrb[2].mxu0  ;;  %v1141_v61 = vadd.f32 %v1140_v60, %v933_v59  ;;  %v2831_v62 = vpop.f32.mrb[1].mxu1  ;;  %v3066_v59 = vld [vmem:[%s3786_s10 + $0x38] sm:$0xff]  }
 0x2db   : > { %v1104_v53 = vpop.f32.mrb[3].mxu0  ;;  %v1146_v57 = vpack.c.bf16 %v1100_v54, %v1100_v54  ;;  %v1143_v63 = vpop.f32.mrb[2].mxu1  ;;  %v3060_v52 = vld [vmem:[%s3786_s10 + $0x8] sm:$0xff]   ;;  %v3062_v54 = vld [vmem:[%s3786_s10 + $0x18] sm:$0xff]  }
 0x2dc   : > { %v1147_v55 = vpack.c.bf16 %v1102_v51, %v1102_v51  ;;  %v1148_v0 = vpack.c.bf16 %v1141_v61, %v1141_v61  ;;  %v2832_v1 = vpop.f32.mrb[3].mxu1  ;;  %v3059_v51 = vld [vmem:[%s3786_s10] sm:$0xff]   ;;  %v3061_v53 = vld [vmem:[%s3786_s10 + $0x10] sm:$0xff]  }
 0x2dd   : > { %2858 = vmatpush3.bf16.msra.mxu0 %v3059_v51 }
 0x2de   : > { %v1155_v56 = vsel %vm1150_vm1, %v1147_v55, 0  ;;  %1269 = vrot.lane.b32.xlu1 %v1147_v55, %s3407_s9  ;;  %v1223_v2 = vsel %vm1221_vm2, %v1148_v0, 0  ;;  %2859 = vmatprep.subr.bf16.mxu0 %v3405_v17  ;;  %v3063_v55 = vld [vmem:[%s3786_s10 + $0x20] sm:$0xff]  }
 0x2df   : > { %2834 = vmatpush3.bf16.xpose.msra.mxu1 %v1155_v56  ;;  %v3064_v56 = vld [vmem:[%s3786_s10 + $0x28] sm:$0xff]  }
 0x2e0   : > { %2839 = vmatprep.subr.bf16.mxu1 %v3405_v17 }
 0x2e1   : > { %2860 = vmatpush3.bf16.msra.mxu0 %v3060_v52 }
 0x2e2   : > { %1266 = vrot.lane.b32.xlu1 %v1146_v57, %s3407_s9  ;;  %2861 = vmatprep.subr.bf16.mxu0 %v3405_v17 }
 0x2e5   : > { %2862 = vmatpush3.bf16.msra.mxu0 %v3061_v53  ;;  %v2650_v53 = vld [vmem:[%s4237_s18] ss:$0 sm:$0xff] }
 0x2e6   : > { %2836 = vmatmul.mubr.msk.bf16.vlgmr.msra.gmra.mrb[4].mxu1 %vm1150_vm1, %v1146_v57  ;;  %2863 = vmatprep.subr.bf16.mxu0 %v3405_v17  ;;  %v3065_v57 = vld [vmem:[%s3786_s10 + $0x30] sm:$0xff]  }
 0x2e7   : > { %2841 = vmatprep.mubr.msk.bf16.mxu1 %vm3406_vm0, %v3405_v17  ;;  %2840 = vmatpush3.bf16.msra.mxu1 %v1223_v2 }
 0x2e8   : > { %2845 = vmatprep.subr.bf16.mxu1 %v3405_v17 }
 0x2e9   : > { %2864 = vmatpush3.bf16.msra.mxu0 %v3062_v54 }
 0x2ea   : > { %2865 = vmatprep.subr.bf16.mxu0 %v3405_v17 }
 0x2ed   : > { %2866 = vmatpush3.bf16.msra.mxu0 %v3063_v55  ;;  %v2651_v55 = vld [vmem:[%s837_s22] ss:$0 sm:$0xff] }
 0x2ee   : > { %2867 = vmatprep.subr.bf16.mxu0 %v3405_v17 }
 0x2f1   : > { %2868 = vmatpush3.bf16.msra.mxu0 %v3064_v56 }
 0x2f2   : > { %2869 = vmatprep.subr.bf16.mxu0 %v3405_v17 }
 0x2f5   : > { %2870 = vmatpush3.bf16.msra.mxu0 %v3065_v57 }
 0x2f6   : > { %2871 = vmatprep.subr.bf16.mxu0 %v3405_v17 }
 0x2f9   : > { %2872 = vmatpush3.bf16.msra.mxu0 %v3066_v59 }
 0x350   : > { %v1270_v21 = vpop.permute.xlu1 %1269 }
 0x351   : > { %v1275_v23 = vsel %vm1150_vm1, %v1270_v21, 0 }
 0x354   : > { %v1267_v24 = vpop.permute.xlu1 %1266 }
 0x3b9   : > { %v1191_v3 = vpop.f32.mrb[4].mxu1 }
 0x3ba   : > { %v1197_v5 = vmul.f32 0.125, %v1191_v3  ;;  %v2837_v6 = vpop.f32.mrb[5].mxu1 }
 0x3bb   : > { %v1194_v7 = vpop.f32.mrb[6].mxu1 }
 0x3bc   : > { %v2838_v8 = vpop.f32.mrb[7].mxu1  ;;  %v1204_v9 = vadd.f32 %v2637_v4, %v1197_v5 }
 0x3be   : > { %v1206_v10 = vsel %vm1205_vm3, %v1204_v9, -inf }
 0x3bf   : > { %1207 = vmax.xlane.f32.xlu0 %v1206_v10  ;;  %v3069_v10 = vld [vmem:[%s3749_s14 + $0x4] ss:$16 sps:$4 sm:$0xff]  }
 0x44c   : > { %v1208_v11 = vpop.xlane.xlu0 %1207 }
 0x44d   : > { %v1209_v12 = vsub.f32 %v1204_v9, %v1208_v11  ;;  %v3067_v9 = vld [vmem:[%s3749_s14] ss:$16 sps:$4 sm:$0xff]   ;;  %v3072_v11 = vld [vmem:[%s3749_s14 + $0xc] ss:$16 sps:$4 sm:$0xff]  }
 0x44e   : > { %1782 = vmatprep.subr.bf16.mxu0 %v3072_v11  ;;  %v3132_v11 = vld [vmem:[%s3814_s29 + $0xe0] sm:$0xff]  }
 0x44f   : > { %v1210_v13 = vmul.f32 1.442695, %v1209_v12  ;;  %v3075_v12 = vld [vmem:[%s3749_s14 + $0x24] ss:$16 sps:$4 sm:$0xff]  }
 0x451   : > { %3147 = vpow2.f32 %v1210_v13  ;;  %v3078_v13 = vld [vmem:[%s3749_s14 + $0x2c] ss:$16 sps:$4 sm:$0xff]  }
 0x45b   : > { %v3148_v14 = vpop.eup %3147 }
 0x45c   : > { %v1212_v15 = vsel %vm1205_vm3, %v3148_v14, 0.0 }
 0x45d   : > { %1213 = vadd.xlane.f32.xlu0 %v1212_v15  ;;  %v3076_v15 = vld [vmem:[%s3749_s14 + $0x28] ss:$16 sps:$4 sm:$0xff]  }
 0x4ea   : > { %v1214_v18 = vpop.xlane.xlu0 %1213 }
 0x4eb   : > { %3149 = vrcp.f32 %v1214_v18  ;;  %v3081_v18 = vld [vmem:[%s3749_s14 + $0x44] ss:$16 sps:$4 sm:$0xff]  }
 0x4f5   : > { %v3150_v19 = vpop.eup %3149 }
 0x4f6   : > { %v1216_v20 = vmul.f32 %v3150_v19, %v3148_v14  ;;  %v3073_v14 = vld [vmem:[%s3749_s14 + $0x20] ss:$16 sps:$4 sm:$0xff]  }
 0x4f7   : > { %v3079_v19 = vld [vmem:[%s3749_s14 + $0x40] ss:$16 sps:$4 sm:$0xff]  }
 0x4f8   : > { %v1217_v22 = vpack.c.bf16 %v1216_v20, %v1216_v20  ;;  %v3082_v20 = vld [vmem:[%s3749_s14 + $0x48] ss:$16 sps:$4 sm:$0xff]  }
 0x4fa   : > { %2842 = vmatmul.mubr.msk.bf16.vlgmr.msra.gmra.mrb[8].mxu1 %vm1205_vm3, %v1217_v22 }
 0x4fb   : > { %2846 = vmatpush3.bf16.xpose.msra.mxu1 %v1275_v23  ;;  %2847 = vmatprep.mubr.msk.bf16.mxu1 %vm3406_vm0, %v3405_v17 }
 0x4fc   : > { %2851 = vmatprep.subr.bf16.mxu1 %v3405_v17 }
 0x502   : > { %2848 = vmatmul.mubr.msk.bf16.vlgmr.msra.gmra.mrb[12].mxu1 %vm1150_vm1, %v1267_v24 }
 0x503   : > { %2853 = vmatprep.mubr.msk.bf16.mxu1 %vm3406_vm0, %v3405_v17  ;;  %v2641_v17 = vld [vmem:[%s4235_s0] ss:$0 sm:$0xff] }
 0x5cd   : > { %v1259_v25 = vpop.f32.mrb[8].mxu1 }
 0x5ce   : > { %v2843_v26 = vpop.f32.mrb[9].mxu1 }
 0x5cf   : > { %v1262_v27 = vpop.f32.mrb[10].mxu1  ;;  %v3090_v26 = vld [vmem:[%s3749_s14 + $0x6c] ss:$16 sps:$4 sm:$0xff]  }
 0x5d0   : > { %v2844_v28 = vpop.f32.mrb[11].mxu1  ;;  %v3085_v27 = vld [vmem:[%s3749_s14 + $0x60] ss:$16 sps:$4 sm:$0xff]  }
 0x5d1   : > { %v3088_v28 = vld [vmem:[%s3749_s14 + $0x68] ss:$16 sps:$4 sm:$0xff]  }
 0x5d5   : > { %v1311_v29 = vpop.f32.mrb[12].mxu1 }
 0x5d6   : > { %v1317_v30 = vmul.f32 0.125, %v1311_v29  ;;  %v2849_v31 = vpop.f32.mrb[13].mxu1  ;;  %v3093_v29 = vld [vmem:[%s3749_s14 + $0x84] ss:$16 sps:$4 sm:$0xff]  }
 0x5d7   : > { %v1314_v32 = vpop.f32.mrb[14].mxu1  ;;  %v3091_v31 = vld [vmem:[%s3749_s14 + $0x80] ss:$16 sps:$4 sm:$0xff]  }
 0x5d8   : > { %v2850_v33 = vpop.f32.mrb[15].mxu1  ;;  %v1318_v34 = vadd.f32 %v2637_v4, %v1317_v30  ;;  %v3096_v30 = vld [vmem:[%s3749_s14 + $0x8c] ss:$16 sps:$4 sm:$0xff]   ;;  %v3094_v32 = vld [vmem:[%s3749_s14 + $0x88] ss:$16 sps:$4 sm:$0xff]  }
 0x5d9   : > { %v3099_v33 = vld [vmem:[%s3749_s14 + $0xa4] ss:$16 sps:$4 sm:$0xff]  }
 0x5da   : > { %v1319_v35 = vsel %vm1205_vm3, %v1318_v34, -inf }
 0x5db   : > { %1320 = vmax.xlane.f32.xlu0 %v1319_v35  ;;  %v3097_v35 = vld [vmem:[%s3749_s14 + $0xa0] ss:$16 sps:$4 sm:$0xff]  }
 0x5f1   : > { %1332 = vrot.lane.b32.xlu0 %v1148_v0, %s3407_s9 }
 0x668   : > { %v1321_v36 = vpop.xlane.xlu0 %1320 }
 0x669   : > { %v1322_v38 = vsub.f32 %v1318_v34, %v1321_v36  ;;  %v3102_v34 = vld [vmem:[%s3749_s14 + $0xac] ss:$16 sps:$4 sm:$0xff]   ;;  %v3100_v36 = vld [vmem:[%s3749_s14 + $0xa8] ss:$16 sps:$4 sm:$0xff]  }
 0x66b   : > { %v1323_v39 = vmul.f32 1.442695, %v1322_v38  ;;  %v3105_v38 = vld [vmem:[%s3749_s14 + $0xc4] ss:$16 sps:$4 sm:$0xff]  }
 0x66c   : > { %v1333_v40 = vpop.permute.xlu0 %1332 }
 0x66d   : > { %3151 = vpow2.f32 %v1323_v39  ;;  %v1338_v41 = vsel %vm1221_vm2, %v1333_v40, 0  ;;  %v3108_v39 = vld [vmem:[%s3749_s14 + $0xcc] ss:$16 sps:$4 sm:$0xff]   ;;  %v3103_v40 = vld [vmem:[%s3749_s14 + $0xc0] ss:$16 sps:$4 sm:$0xff]  }
 0x66e   : > { %2852 = vmatpush3.bf16.msra.mxu1 %v1338_v41  ;;  %v3106_v41 = vld [vmem:[%s3749_s14 + $0xc8] ss:$16 sps:$4 sm:$0xff]  }
 0x66f   : > { %1741 = vmatprep.subr.bf16.mxu1 %v3069_v10  ;;  %v3130_v10 = vld [vmem:[%s3814_s29 + $0x98] sm:$0xff]  }
 0x677   : > { %v3152_v42 = vpop.eup %3151 }
 0x678   : > { %v1325_v45 = vsel %vm1205_vm3, %v3152_v42, 0.0 }
 0x679   : > { %1326 = vadd.xlane.f32.xlu1 %v1325_v45  ;;  %v3114_v45 = vld [vmem:[%s3749_s14 + $0xec] ss:$16 sps:$4 sm:$0xff]  }
 0x706   : > { %v1327_v47 = vpop.xlane.xlu1 %1326 }
 0x707   : > { %3153 = vrcp.f32 %v1327_v47  ;;  %v3109_v47 = vld [vmem:[%s3749_s14 + $0xe0] ss:$16 sps:$4 sm:$0xff]  }
 0x711   : > { %v3154_v48 = vpop.eup %3153 }
 0x712   : > { %v1329_v49 = vmul.f32 %v3154_v48, %v3152_v42  ;;  %v3111_v42 = vld [vmem:[%s3749_s14 + $0xe4] ss:$16 sps:$4 sm:$0xff]   ;;  %v3112_v48 = vld [vmem:[%s3749_s14 + $0xe8] ss:$16 sps:$4 sm:$0xff]  }
 0x714   : > { %v1330_v50 = vpack.c.bf16 %v1329_v49, %v1329_v49 }
 0x716   : > { %2854 = vmatmul.mubr.msk.bf16.vlgmr.msra.gmra.mrb[16].mxu1 %vm1205_vm3, %v1330_v50 }
 0x717   : > { %1773 = vmatprep.mubr.bf16.mxu1 %v3404_v16  ;;  %1742 = vmatpush1.bf16.msra.mxu1 %v3067_v9  ;;  %v3129_v9 = vld [vmem:[%s3814_s29 + $0x18] sm:$0xff]  }
 0x718   : > { %1743 = vmatprep.subr.bf16.mxu1 %v3075_v12  ;;  %v3133_v12 = vld [vmem:[%s3814_s29 + $0x20] sm:$0xff]  }
 0x71b   : > { %1744 = vmatpush1.bf16.msra.mxu1 %v3073_v14  ;;  %v3135_v14 = vld [vmem:[%s3814_s29 + $0x68] sm:$0xff]  }
 0x71c   : > { %1745 = vmatprep.subr.bf16.mxu1 %v3081_v18  ;;  %v3137_v18 = vld [vmem:[%s3814_s29 + $0x28] sm:$0xff]  }
 0x71f   : > { %1746 = vmatpush1.bf16.msra.mxu1 %v3079_v19  ;;  %v3139_v19 = vld [vmem:[%s3814_s29 + $0x70] sm:$0xff]  }
 0x7e9   : > { %v1374_v60 = vpop.f32.mrb[16].mxu1 }
 0x7ea   : > { %1381 = vrot.lane.b32.xlu0 %v1374_v60, %s3407_s9  ;;  %v2855_v61 = vpop.f32.mrb[17].mxu1  ;;  %v3115_v60 = vld [vmem:[%s3814_s29 + $0x40] sm:$0xff]  }
 0x7eb   : > { %v1377_v62 = vpop.f32.mrb[18].mxu1  ;;  %v3116_v61 = vld [vmem:[%s3814_s29 + $0xc0] sm:$0xff]  }
 0x7ec   : > { %v2856_v63 = vpop.f32.mrb[19].mxu1  ;;  %v3117_v62 = vld [vmem:[%s3814_s29] sm:$0xff]  }
 0x7ed   : > { %v3118_v63 = vld [vmem:[%s3814_s29 + $0x80] sm:$0xff]  }
 0x85c   : > { %v1382_v0 = vpop.permute.xlu0 %1381 }
 0x85d   : > { %v1384_v1 = vsel %vm1150_vm1, %v1259_v25, %v1382_v0  ;;  %v3087_v25 = vld [vmem:[%s3749_s14 + $0x64] ss:$16 sps:$4 sm:$0xff]   ;;  %v3119_v0 = vld [vmem:[%s3814_s29 + $0x48] sm:$0xff]  }
 0x85e   : > { %v1385_v2 = vpack.c.bf16 %v1384_v1, %v1384_v1  ;;  %1747 = vmatprep.subr.bf16.mxu1 %v3087_v25  ;;  %v3120_v1 = vld [vmem:[%s3814_s29 + $0xc8] sm:$0xff]   ;;  %v3145_v25 = vld [vmem:[%s3814_s29 + $0x38] sm:$0xff]  }
 0x85f   : > { %1748 = vmatpush1.bf16.msra.mxu1 %v3085_v27  ;;  %v1559_v27 = vld [vmem:[%s3804_s7] sm:$0xf] }
 0x860   : > { %2874 = vmatmul.mubr.bf16.vlgmr.msra.gmra.mrb[4].mxu0 %v1385_v2  ;;  %1749 = vmatprep.subr.bf16.mxu1 %v3093_v29  ;;  %v3121_v2 = vld [vmem:[%s3814_s29 + $0x8] sm:$0xff]   ;;  %v1564_v29 = vrot.slane %v1559_v27, %v924_v46 }
 0x861   : > { %1814 = vmatprep.mubr.bf16.mxu0 %v3404_v16  ;;  %v3070_v16 = vld [vmem:[%s3749_s14 + $0x8] ss:$16 sps:$4 sm:$0xff]  }
 0x862   : > { %1783 = vmatpush1.bf16.msra.mxu0 %v3070_v16  ;;  %v3131_v16 = vld [vmem:[%s3814_s29 + $0x60] sm:$0xff]  }
 0x863   : > { %1784 = vmatprep.subr.bf16.mxu0 %v3078_v13  ;;  %1750 = vmatpush1.bf16.msra.mxu1 %v3091_v31  ;;  %v3134_v13 = vld [vmem:[%s3814_s29 + $0xa0] sm:$0xff]   ;;  %v1568_v31 = vrot.slane %v1559_v27, %v928_v44 }
 0x864   : > { %1751 = vmatprep.subr.bf16.mxu1 %v3099_v33 }
 0x866   : > { %1785 = vmatpush1.bf16.msra.mxu0 %v3076_v15  ;;  %v3136_v15 = vld [vmem:[%s3814_s29 + $0xe8] sm:$0xff]  }
 0x867   : > { %1752 = vmatpush1.bf16.msra.mxu1 %v3097_v35 }
 0x868   : > { %1753 = vmatprep.subr.bf16.mxu1 %v3105_v38 }
 0x86b   : > { %1754 = vmatpush1.bf16.msra.mxu1 %v3103_v40 }
 0x86c   : > { %1755 = vmatprep.subr.bf16.mxu1 %v3111_v42 }
 0x86f   : > { %1756 = vmatpush1.bf16.msra.mxu1 %v3109_v47 }
 0x870   : > { %2760 = vmatprep.subr.bf16.mxu1 %v3115_v60 }
 0x933   : > { %v1491_v3 = vpop.f32.mrb[4].mxu0 }
 0x934   : > { %v1492_v4 = vadd.f32 %v2641_v17, %v1491_v3  ;;  %v2875_v5 = vpop.f32.mrb[5].mxu0  ;;  %v3122_v17 = vld [vmem:[%s3814_s29 + $0x88] sm:$0xff]   ;;  %v3123_v3 = vld [vmem:[%s3814_s29 + $0x50] sm:$0xff]  }
 0x935   : > { %v1494_v6 = vpop.f32.mrb[6].mxu0  ;;  %v3125_v5 = vld [vmem:[%s3814_s29 + $0x10] sm:$0xff]  }
 0x936   : > { %v2876_v7 = vpop.f32.mrb[7].mxu0  ;;  %v1497_v8 = vadd.f32 %v1492_v4, %v3853_v37  ;;  %v3084_v37 = vld [vmem:[%s3749_s14 + $0x4c] ss:$16 sps:$4 sm:$0xff]   ;;  %v3124_v4 = vld [vmem:[%s3814_s29 + $0xd0] sm:$0xff]  }
 0x937   : > { %1786 = vmatprep.subr.bf16.mxu0 %v3084_v37  ;;  %v3126_v6 = vld [vmem:[%s3814_s29 + $0x90] sm:$0xff]   ;;  %v3127_v7 = vld [vmem:[%s3814_s29 + $0x58] sm:$0xff]   ;;  %v3138_v37 = vld [vmem:[%s3814_s29 + $0xa8] sm:$0xff]  }
 0x938   : > { %1500 = vadd.xlane.f32.xlu0 %v1497_v8  ;;  %1787 = vmatpush1.bf16.msra.mxu0 %v3082_v20  ;;  %v3140_v20 = vld [vmem:[%s3814_s29 + $0xf0] sm:$0xff]  }
 0x939   : > { %1788 = vmatprep.subr.bf16.mxu0 %v3090_v26  ;;  %v3146_v26 = vld [vmem:[%s3814_s29 + $0xb8] sm:$0xff]  }
 0x93c   : > { %1789 = vmatpush1.bf16.msra.mxu0 %v3088_v28  ;;  %v1575_v28 = vsub.s32 3, %v3872_v43 }
 0x93d   : > { %1790 = vmatprep.subr.bf16.mxu0 %v3096_v30  ;;  %v1572_v30 = vrot.slane %v1559_v27, %v932_v58 }
 0x940   : > { %1791 = vmatpush1.bf16.msra.mxu0 %v3094_v32  ;;  %v1576_v32 = vrot.slane %v1559_v27, %v1575_v28 }
 0x941   : > { %1792 = vmatprep.subr.bf16.mxu0 %v3102_v34 }
 0x944   : > { %1793 = vmatpush1.bf16.msra.mxu0 %v3100_v36 }
 0x945   : > { %1794 = vmatprep.subr.bf16.mxu0 %v3108_v39 }
 0x948   : > { %1795 = vmatpush1.bf16.msra.mxu0 %v3106_v41 }
 0x949   : > { %1796 = vmatprep.subr.bf16.mxu0 %v3114_v45 }
 0x94c   : > { %1797 = vmatpush1.bf16.msra.mxu0 %v3112_v48 }
 0x94d   : > { %2782 = vmatprep.subr.bf16.mxu0 %v3116_v61 }
 0x9c5   : > { %v1501_v21 = vpop.xlane.xlu0 %1500 }
 0x9c6   : > { %v1503_v22 = vmul.f32 0.0078125, %v1501_v21  ;;  %v3141_v21 = vld [vmem:[%s3814_s29 + $0x30] sm:$0xff]  }
 0x9c8   : > { %v1504_v23 = vsub.f32 %v1497_v8, %v1503_v22  ;;  %v3128_v8 = vld [vmem:[%s3814_s29 + $0xd8] sm:$0xff]   ;;  %v3142_v22 = vld [vmem:[%s3814_s29 + $0xb0] sm:$0xff]  }
 0x9ca   : > { %v1505_v24 = vmul.f32 %v1504_v23, %v1504_v23 }
 0x9cc   : > { %1506 = vadd.xlane.f32.xlu1 %v1505_v24  ;;  %v3144_v24 = vld [vmem:[%s3814_s29 + $0xf8] sm:$0xff]  }
 0xa59   : > { %v1507_v49 = vpop.xlane.xlu1 %1506 }
 0xa5a   : > { %v1508_v50 = vmul.f32 0.0078125, %v1507_v49 }
 0xa5c   : > { %v1509_v51 = vadd.f32 1e-12, %v1508_v50 }
 0xa5e   : > { %3155 = vrsqrt.f32 %v1509_v51 }
 0xa68   : > { %v3156_v52 = vpop.eup %3155 }
 0xa69   : > { %v1511_v54 = vmul.f32 %v3156_v52, %v1504_v23  ;;  %v3143_v23 = vld [vmem:[%s3814_s29 + $0x78] sm:$0xff]  }
 0xa6b   : > { %v1518_v56 = vmul.f32 %v2650_v53, %v1511_v54 }
 0xa6d   : > { %v3980_v57 = vadd.f32 %v2651_v55, %v1518_v56 }
 0xa6f   : > { %v1526_v59 = vpack.c.bf16 %v3980_v57, %v3980_v57 }
 0xa71   : > { %1774 = vmatmul.mubr.bf16.vlgmr.msra.gmra.mrb[20].mxu1 %v1526_v59  ;;  %1815 = vmatmul.mubr.bf16.vlgmr.msra.gmra.mrb[8].mxu0 %v1526_v59 }
 0xa72   : > { %2761 = vmatpush3.bf16.msra.mxu1 %v3117_v62  ;;  %2783 = vmatpush3.bf16.msra.mxu0 %v3118_v63 }
 0xa73   : > { %2762 = vmatprep.subr.bf16.mxu1 %v3119_v0  ;;  %2784 = vmatprep.subr.bf16.mxu0 %v3120_v1 }
 0xa76   : > { %2763 = vmatpush3.bf16.msra.mxu1 %v3121_v2  ;;  %2785 = vmatpush3.bf16.msra.mxu0 %v3122_v17 }
 0xa77   : > { %2764 = vmatprep.subr.bf16.mxu1 %v3123_v3  ;;  %2786 = vmatprep.subr.bf16.mxu0 %v3124_v4 }
 0xa7a   : > { %2765 = vmatpush3.bf16.msra.mxu1 %v3125_v5  ;;  %2787 = vmatpush3.bf16.msra.mxu0 %v3126_v6 }
 0xa7b   : > { %2766 = vmatprep.subr.bf16.mxu1 %v3127_v7  ;;  %2788 = vmatprep.subr.bf16.mxu0 %v3128_v8 }
 0xa7e   : > { %2767 = vmatpush3.bf16.msra.mxu1 %v3129_v9  ;;  %2789 = vmatpush3.bf16.msra.mxu0 %v3130_v10 }
 0xa7f   : > { %2768 = vmatprep.subr.bf16.mxu1 %v3131_v16  ;;  %2790 = vmatprep.subr.bf16.mxu0 %v3132_v11 }
 0xa82   : > { %2769 = vmatpush3.bf16.msra.mxu1 %v3133_v12  ;;  %2791 = vmatpush3.bf16.msra.mxu0 %v3134_v13 }
 0xa83   : > { %2770 = vmatprep.subr.bf16.mxu1 %v3135_v14  ;;  %2792 = vmatprep.subr.bf16.mxu0 %v3136_v15 }
 0xa86   : > { %2771 = vmatpush3.bf16.msra.mxu1 %v3137_v18  ;;  %2793 = vmatpush3.bf16.msra.mxu0 %v3138_v37 }
 0xa87   : > { %2772 = vmatprep.subr.bf16.mxu1 %v3139_v19  ;;  %2794 = vmatprep.subr.bf16.mxu0 %v3140_v20 }
 0xa8a   : > { %2773 = vmatpush3.bf16.msra.mxu1 %v3141_v21  ;;  %2795 = vmatpush3.bf16.msra.mxu0 %v3142_v22 }
 0xa8b   : > { %2774 = vmatprep.subr.bf16.mxu1 %v3143_v23  ;;  %2796 = vmatprep.subr.bf16.mxu0 %v3144_v24  ;;  %v2684_v24 = vld [vmem:[%s844_s4] ss:$0 sm:$0xff] }
 0xa8e   : > { %2775 = vmatpush3.bf16.msra.mxu1 %v3145_v25  ;;  %2797 = vmatpush3.bf16.msra.mxu0 %v3146_v26 }
 0xb44   : > { %v1775_v33 = vpop.f32.mrb[20].mxu1  ;;  %v1816_v34 = vpop.f32.mrb[8].mxu0 }
 0xb45   : > { %v1776_v35 = vadd.f32 %v1775_v33, %v1564_v29  ;;  %v1817_v36 = vadd.f32 %v1816_v34, %v1572_v30  ;;  %v1777_v38 = vpop.f32.mrb[21].mxu1  ;;  %v1818_v39 = vpop.f32.mrb[9].mxu0 }
 0xb46   : > { %v1778_v40 = vadd.f32 %v1777_v38, %v1568_v31  ;;  %v1819_v41 = vadd.f32 %v1818_v39, %v1576_v32  ;;  %v1779_v42 = vpop.f32.mrb[22].mxu1  ;;  %v1820_v45 = vpop.f32.mrb[10].mxu0 }
 0xb47   : > { %v1823_v47 = vmul.f32 %v1776_v35, %v1776_v35  ;;  %v1825_v48 = vmul.f32 %v1817_v36, %v1817_v36  ;;  %v1780_v46 = vpop.f32.mrb[23].mxu1  ;;  %v1821_v49 = vpop.f32.mrb[11].mxu0 }
 0xb48   : > { %v1824_v50 = vmul.f32 %v1778_v40, %v1778_v40  ;;  %v1826_v58 = vmul.f32 %v1819_v41, %v1819_v41 }
 0xb49   : > { %v1827_v51 = vmul.f32 %v1823_v47, %v1776_v35  ;;  %v1829_v43 = vmul.f32 %v1825_v48, %v1817_v36  ;;  %v2717_v48 = vld [vmem:[%s847_s6] ss:$0 sm:$0xff] }
 0xb4a   : > { %v1828_v44 = vmul.f32 %v1824_v50, %v1778_v40  ;;  %v1830_v52 = vmul.f32 %v1826_v58, %v1819_v41  ;;  %v3167_v58 = vld [vmem:[%s4242_s16] sm:$0xff] (!%p2719_p12)  }
 0xb4b   : > { %v1831_v53 = vmul.f32 0.044715, %v1827_v51  ;;  %v1833_v54 = vmul.f32 0.044715, %v1829_v43  ;;  %v3408_v51 = vmov (!%p2719_p12), 0.0   ;;  %v3168_v43 = vld [vmem:[%s4242_s16 + $0x8] sm:$0xff] (!%p2719_p12)  }
 0xb4c   : > { %v1832_v55 = vmul.f32 0.044715, %v1828_v44  ;;  %v1834_v56 = vmul.f32 0.044715, %v1830_v52  ;;  %2877 = vmatprep.subr.bf16.mxu0 (!%p2719_p12), %v3408_v51  ;;  %v3169_v44 = vld [vmem:[%s4242_s16 + $0x10] sm:$0xff] (!%p2719_p12)   ;;  %v3170_v52 = vld [vmem:[%s4242_s16 + $0x18] sm:$0xff] (!%p2719_p12)  }
 0xb4d   : > { %v1835_v59 = vadd.f32 %v1831_v53, %v1776_v35  ;;  %v1837_v60 = vadd.f32 %v1833_v54, %v1817_v36  ;;  %v3171_v53 = vld [vmem:[%s4242_s16 + $0x20] sm:$0xff] (!%p2719_p12)   ;;  %v3172_v54 = vld [vmem:[%s4242_s16 + $0x28] sm:$0xff] (!%p2719_p12)  }
 0xb4e   : > { %v1836_v61 = vadd.f32 %v1832_v55, %v1778_v40  ;;  %v1838_v62 = vadd.f32 %v1834_v56, %v1819_v41  ;;  %v3173_v55 = vld [vmem:[%s4242_s16 + $0x30] sm:$0xff] (!%p2719_p12)   ;;  %v3174_v56 = vld [vmem:[%s4242_s16 + $0x38] sm:$0xff] (!%p2719_p12)  }
 0xb4f   : > { %v1839_v63 = vmul.f32 0.7978846, %v1835_v59  ;;  %v1841_v0 = vmul.f32 0.7978846, %v1837_v60  ;;  %v2256_v60 = vld [vmem:[%s4243_s5] sm:$0x1] (!%p2719_p12) }
 0xb50   : > { %v1840_v1 = vmul.f32 0.7978846, %v1836_v61  ;;  %v1842_v2 = vmul.f32 0.7978846, %v1838_v62 }
 0xb51   : > { %3157 = vtanh.f32 %v1839_v63 }
 0xb52   : > { %3159 = vtanh.f32 %v1841_v0 }
 0xb53   : > { %3161 = vtanh.f32 %v1840_v1 }
 0xb54   : > { %3163 = vtanh.f32 %v1842_v2 }
 0xb5b   : > { %v3158_v17 = vpop.eup %3157 }
 0xb5c   : > { %v3160_v3 = vpop.eup %3159  ;;  %v1847_v4 = vadd.f32 1.0, %v3158_v17 }
 0xb5d   : > { %v3162_v5 = vpop.eup %3161  ;;  %v1849_v6 = vadd.f32 1.0, %v3160_v3 }
 0xb5e   : > { %v3164_v7 = vpop.eup %3163  ;;  %v1848_v8 = vadd.f32 1.0, %v3162_v5  ;;  %v1851_v9 = vmul.f32 0.5, %v1847_v4 }
 0xb5f   : > { %v1850_v10 = vadd.f32 1.0, %v3164_v7  ;;  %v1853_v16 = vmul.f32 0.5, %v1849_v6 }
 0xb60   : > { %v1852_v11 = vmul.f32 0.5, %v1848_v8  ;;  %v1855_v13 = vmul.f32 %v1851_v9, %v1776_v35 }
 0xb61   : > { %v1854_v12 = vmul.f32 0.5, %v1850_v10  ;;  %v1857_v15 = vmul.f32 %v1853_v16, %v1817_v36 }
 0xb62   : > { %v1856_v14 = vmul.f32 %v1852_v11, %v1778_v40  ;;  %v1859_v20 = vpack.c.bf16 %v1855_v13, %v1855_v13 }
 0xb63   : > { %v1858_v18 = vmul.f32 %v1854_v12, %v1819_v41  ;;  %v1861_v21 = vpack.c.bf16 %v1857_v15, %v1857_v15 }
 0xb64   : > { %v1860_v37 = vpack.c.bf16 %v1856_v14, %v1856_v14 }
 0xb65   : > { %v1862_v19 = vpack.c.bf16 %v1858_v18, %v1858_v18 }
 0xb66   : > { %2158 = vmatprep.mubr.bf16.mxu1 %v1860_v37 }
 0xb67   : > { %2198 = vmatprep.mubr.bf16.mxu0 %v1862_v19  ;;  %2159 = vmatmul.mubr.bf16.vlgmr.msra.gmra.mrb[24].mxu1 %v1859_v20 }
 0xb68   : > { %2199 = vmatmul.mubr.bf16.vlgmr.msra.gmra.mrb[12].mxu0 %v1861_v21 }
 0xb69   : > { %2878 = vmatpush3.bf16.msra.mxu0 (!%p2719_p12), %v3167_v58  ;;  %2893 = vmatprep.mubr.msk.bf16.mxu0 (!%p2719_p12), %vm3409_vm4, %v3408_v51 }
 0xb6a   : > { %2879 = vmatprep.subr.bf16.mxu0 (!%p2719_p12), %v3408_v51 }
 0xb6d   : > { %2880 = vmatpush3.bf16.msra.mxu0 (!%p2719_p12), %v3168_v43 }
 0xb6e   : > { %2881 = vmatprep.subr.bf16.mxu0 (!%p2719_p12), %v3408_v51 }
 0xb71   : > { %2882 = vmatpush3.bf16.msra.mxu0 (!%p2719_p12), %v3169_v44 }
 0xb72   : > { %2883 = vmatprep.subr.bf16.mxu0 (!%p2719_p12), %v3408_v51 }
 0xb75   : > { %2884 = vmatpush3.bf16.msra.mxu0 (!%p2719_p12), %v3170_v52 }
 0xb76   : > { %2885 = vmatprep.subr.bf16.mxu0 (!%p2719_p12), %v3408_v51 }
 0xb79   : > { %2886 = vmatpush3.bf16.msra.mxu0 (!%p2719_p12), %v3171_v53 }
 0xb7a   : > { %2887 = vmatprep.subr.bf16.mxu0 (!%p2719_p12), %v3408_v51 }
 0xb7d   : > { %2888 = vmatpush3.bf16.msra.mxu0 (!%p2719_p12), %v3172_v54 }
 0xb7e   : > { %2889 = vmatprep.subr.bf16.mxu0 (!%p2719_p12), %v3408_v51 }
 0xb81   : > { %2890 = vmatpush3.bf16.msra.mxu0 (!%p2719_p12), %v3173_v55 }
 0xb82   : > { %2891 = vmatprep.subr.bf16.mxu0 (!%p2719_p12), %v3408_v51 }
 0xb85   : > { %2892 = vmatpush3.bf16.msra.mxu0 (!%p2719_p12), %v3174_v56 }
 0xc3a   : > { %v2776_v22 = vpop.f32.mrb[24].mxu1 }
 0xc3b   : > { %v2798_v23 = vpop.f32.mrb[12].mxu0  ;;  %v2777_v25 = vpop.f32.mrb[25].mxu1 }
 0xc3c   : > { %v2778_v26 = vadd.f32 %v2777_v25, %v2776_v22  ;;  %v2799_v27 = vpop.f32.mrb[13].mxu0  ;;  %v2779_v28 = vpop.f32.mrb[26].mxu1 }
 0xc3d   : > { %v2800_v29 = vadd.f32 %v2799_v27, %v2798_v23  ;;  %v2801_v30 = vpop.f32.mrb[14].mxu0  ;;  %v2780_v31 = vpop.f32.mrb[27].mxu1 }
 0xc3e   : > { %v2161_v32 = vadd.f32 %v2778_v26, %v2684_v24  ;;  %v2802_v33 = vpop.f32.mrb[15].mxu0 }
 0xc40   : > { %v2201_v34 = vadd.f32 %v2800_v29, %v2161_v32 }
 0xc42   : > { %v2206_v35 = vadd.f32 %v2201_v34, %v3980_v57  ;;  %v2718_v57 = vld [vmem:[%s850_s8] ss:$0 sm:$0xff] }
 0xc44   : > { %2209 = vadd.xlane.f32.xlu1 %v2206_v35 }
 0xcd1   : > { %v2210_v36 = vpop.xlane.xlu1 %2209 }
 0xcd2   : > { %v2211_v38 = vmul.f32 0.0078125, %v2210_v36 }
 0xcd4   : > { %v2212_v39 = vsub.f32 %v2206_v35, %v2211_v38 }
 0xcd6   : > { %v2213_v40 = vmul.f32 %v2212_v39, %v2212_v39 }
 0xcd8   : > { %2214 = vadd.xlane.f32.xlu1 %v2213_v40 }
 0xd65   : > { %v2215_v41 = vpop.xlane.xlu1 %2214 }
 0xd66   : > { %v2216_v42 = vmul.f32 0.0078125, %v2215_v41 }
 0xd68   : > { %v2217_v45 = vadd.f32 1e-12, %v2216_v42 }
 0xd6a   : > { %3165 = vrsqrt.f32 %v2217_v45 }
 0xd74   : > { %v3166_v47 = vpop.eup %3165 }
 0xd75   : > { %v2219_v46 = vmul.f32 %v3166_v47, %v2212_v39  ;;  %2238 = sbr.rel (%p2719_p12) target bundleno = 3679 (0xe5f), region = 112 }
 0xd77   : > { %v2226_v49 = vmul.f32 %v2717_v48, %v2219_v46 }
 0xd79   : > { %v2233_v50 = vadd.f32 %v2718_v57, %v2226_v49 }
 0xd7b   : > { %2234 = vst [vmem:[#allocation2] sm:$0xff] %v2233_v50  ;;  %v2239_v59 = vpack.c.bf16 (!%p2719_p12), %v2233_v50, %v2233_v50 }
 0xd7d   : > { %2894 = vmatmul.mubr.bf16.vlgmr.msra.gmra.mrb[0].mxu0 %v2239_v59 }
 0xe50   : > { %v2339_v61 = vpop.f32.mrb[0].mxu0 }
 0xe51   : > { %v2340_v62 = vadd.f32 %v2339_v61, %v2256_v60  ;;  %v2895_v63 = vpop.f32.mrb[1].mxu0 }
 0xe52   : > { %v2342_v0 = vpop.f32.mrb[2].mxu0 }
 0xe53   : > { %3175 = vtanh.f32 %v2340_v62  ;;  %v2896_v1 = vpop.f32.mrb[3].mxu0 }
 0xe5d   : > { %v3176_v2 = vpop.eup %3175 }
 0xe5e   : > { %2346 = vst [vmem:[%s3818_s17] sm:$0x1] %v3176_v2 }
 0xe5f PF: > { %s4244_s7 = sld [smem:[#allocation17_spill]]  ;;  %s4245_s22 = sld [smem:[#allocation25_spill]] }
 0xe60   : > { %s4246_s13 = sld [smem:[#allocation45_spill]]  ;;  %s2360_s25 = sshll.u32 %s3818_s17, 4  ;;  %s2361_s25 = int_to_ptr.vmem [resolvable:$true] %s2360_s25 }
 0xe61   : > { %s4247_s27 = sand.u32 1, %s3357_s28   ;;  %s3267_s12 = scalar_lea.vmem %s2361_s25, 16 }
 0xe62   : > { %s2348_s9 = scalar_lea.sflag [#allocation5], %s4247_s27  ;;  %p3268_p7 = scmp.ne.s32.totalorder %s2361_s25, %s3267_s12 }
 0xe63   : > { %s3410_s6 = smov [#allocation9]  }
 0xe64   : > { %s3271_s11 = sshll.u32 %s3410_s6, 4  ;;  %s3272_s11 = int_to_ptr.vmem [resolvable:$false] %s3271_s11 }
 0xe65   : > { %s2728_s29 = sshll.u32 %s4244_s7, 4  ;;  %p4248_p11 = scmp.ne.s32.totalorder %s4245_s22, 0 }
 0xe66   : > { %s4073_s26 = scalar_lea.hbm %s4246_s13, %s2728_s29  ;;  %s3273_s8 = scalar_lea.vmem %s3272_s11, 32 }
 0xe67   : > { %p3269_p0 = pnand %p3268_p7, %p4248_p11  ;;  %p3274_p13 = scmp.lt.s32.totalorder %s2361_s25, %s3272_s11 }
 0xe68   : > { %p3275_p2 = scmp.lt.s32.totalorder %s3273_s8, %s3267_s12 }
 0xe69   : > { %p3270_p1 = pneg %p3269_p0 }
 0xe6a   : > { %p3276_p6 = por %p3275_p2, %p3274_p13 }
 0xe6c   : > { %p3277_p9 = pnand %p3276_p6, %p3270_p1 }
 0xe6e   : > { %3280 = shalt.err (!%p3277_p9)
}
 0xe6f   : > { %s3281_s17 = scalar_lea.hbm %s4073_s26, 16  ;;  %s3285_s24 = scalar_lea.hbm %s4246_s13, 32 }
 0xe70   : > { %p3282_p5 = scmp.ne.s32.totalorder %s4073_s26, %s3281_s17  ;;  %p3286_p10 = scmp.lt.u32.totalorder %s4073_s26, %s4246_s13 }
 0xe71   : > { %p3287_p8 = scmp.lt.u32.totalorder %s3285_s24, %s3281_s17  ;;  %p3289_p7 = scmp.lt.u32.totalorder %s3281_s17, %s4073_s26 }
 0xe72   : > { %p3283_p3 = pnand %p3282_p5, %p4248_p11 }
 0xe73   : > { %p3288_p12 = por %p3287_p8, %p3286_p10 }
 0xe74   : > { %p3284_p4 = pneg %p3283_p3 }
 0xe75   : > { %p3290_p0 = por %p3289_p7, %p3288_p12 }
 0xe77   : > { %p3291_p1 = pnand %p3290_p0, %p3284_p4 }
 0xe79   : > { %3294 = shalt.err (!%p3291_p1)
}
 0xe7a   : > { %2907 = dma.vmem_to_hbm [thread:$0]  (%p4248_p11), %s2361_s25, 16, %s4073_s26, %s2348_s9  }
 0xe7b PF: > { %s4249_s30 = sld [smem:[#allocation20_spill]]  ;;  %s4250_s0 = sld [smem:[#allocation13_spill]] }
 0xe7c   : > { %s4251_s2 = sld [smem:[#allocation26_spill]] }
 0xe81   : > { %p2924_p13 = scmp.ge.s32.totalorder %s4249_s30, 2  ;;  %s2372_s19 = sand.u32 1, %s4250_s0  }
 0xe82   : > { %p4252_p2 = scmp.ne.s32.totalorder %s4251_s2, 0  ;;  %s2373_s3 = scalar_lea.sflag [#allocation5], %s2372_s19 }
 0xe84   : > { %p2920_p6 = pnand %p2924_p13, %p4252_p2 }
 0xe86   : > { %3348 = dma.done.wait (!%p2920_p6), %s2373_s3, 16  }
 0xe87   : > { %3350 = vsyncadd (!%p2920_p6), %s2373_s3, 4294967280  ;;  %s37_s2 = sadd.s32 1, %s4249_s30   ;;  %s4253_s18 = sld [smem:[#allocation14_spill]] }
 0xe88   : > { %p34_p9 = scmp.ge.s32.totalorder %s37_s2, 6   ;;  %s4254_s29 = sld [smem:[#allocation24_spill]] }
 0xe89   : > { %s4255_s30 = sld [smem:[#allocation15_spill]]  ;;  %s4256_s0 = sld [smem:[#allocation16_spill]] }
 0xe8a   : > { %s4257_s19 = sld [smem:[#allocation23_spill]]  ;;  %s4258_s1 = sld [smem:[#allocation18_spill]] }
 0xe8b   : > { %s4259_s20 = sld [smem:[#allocation19_spill]]  ;;  %s4260_s21 = sld [smem:[#allocation21_spill]] }
 0xe8c   : > { %s4261_s22 = sld [smem:[#allocation22_spill]]  ;;  %s4262_s27 = smov %s3357_s28 }
 0xe8d   : > { %s4263_s28 = smov %s4253_s18  ;;  %36 = sbr.rel (!%p34_p9) target bundleno = 31 (0x1f), region = 202 }
 0xe94   :  { %2377 = vsyncpa [#allocation4], 1 }
 0xe95   :  { %2379 = vsyncpa [#allocation4 + $0x1], 1 }
 0xe96   :  { %2380 = vsyncpa [#allocation7], 1 }
 0xe97   :  { %2382 = vsyncpa [#allocation7 + $0x1], 1 }
 0xe98   :  { %2383 = vsyncpa [#allocation5], 1 }
 0xe99   :  { %2385 = vsyncpa [#allocation5 + $0x1], 1 }

</bundles_post_ra>
